<compile_context>
chip_gen: v7x
topology: tpu7x:2x2x1
jax: 0.10.0
libtpu: 0.0.40
codegen_flags: <defaults>
</compile_context>

<pallas_src>
import functools

import jax
import jax.numpy as jnp
from jax import lax
from jax.experimental import pallas as pl
from jax.experimental.pallas import tpu as pltpu

NEG_SLOPE = 0.2  # DGL GATConv default leaky-relu slope


# ------------------------- fused HAN layer kernel -----------------------------
def han_kernel(h_ref, w_ref, r_ref, l_ref, b_ref, adj_ref, w1_ref, b1_ref,
               w2_ref, o_ref, m_sc, l_sc, acc_sc, *, heads, out_dim):
    # h_ref   : (N, F_in)      bf16   node features (shared across metapaths)
    # w_ref   : (F_in, H*D)    bf16   merged per-head fc weights for metapath m
    # r_ref   : (H*D, H)       f32    packed attn_r (er = f_all @ r)
    # l_ref   : (H, H*D)       f32    packed attn_l (el = l @ f_all^T)
    # b_ref   : (1, H*D)       f32    per-head bias, head-major
    # adj_ref : (N, N)         int8   adj[dst, src]
    # w1_ref  : (H*D, Hs), b1_ref: (1, Hs), w2_ref: (1, Hs)   semantic attention
    # o_ref   : (N, H*D)       f32    fused output
    # scratch : m_sc/l_sc (1,1) f32 online-softmax state, acc_sc (N, H*D) f32
    m = pl.program_id(0)
    n = h_ref.shape[0]

    @pl.when(m == 0)
    def _():
        m_sc[...] = jnp.full_like(m_sc, -1e30)
        l_sc[...] = jnp.zeros_like(l_sc)
        acc_sc[...] = jnp.zeros_like(acc_sc)

    # ---------------- GAT for metapath m (all heads in one fc matmul) ---------
    f_all = jnp.dot(h_ref[...], w_ref[...],
                    preferred_element_type=jnp.float32)           # (N, H*D) f32

    # attention logits for all heads with two lane-dense matmuls
    er_all = jnp.dot(f_all, r_ref[...],
                     preferred_element_type=jnp.float32)          # (N_dst, H)
    el_all = lax.dot_general(l_ref[...], f_all, (((1,), (1,)), ((), ())),
                             preferred_element_type=jnp.float32)  # (H, N_src)

    mask = adj_ref[...].astype(jnp.float32) > 0.0                 # (N, N)

    head_outs = []
    for hd in range(heads):                      # static unroll, H is small
        er = er_all[:, hd:hd + 1]                # (N_dst, 1)
        el = el_all[hd:hd + 1, :]                # (1, N_src)
        e = er + el                              # (N_dst, N_src)
        e = jnp.where(e > 0, e, NEG_SLOPE * e)   # leaky relu
        e = jnp.where(mask, e, -1e30)

        # masked edge softmax over incoming edges (axis=1 = src);
        # normalize AFTER aggregation (EUP reciprocal, not an (N,N) divide)
        e_max = jnp.max(e, axis=1, keepdims=True)
        p = jnp.exp(e - e_max)
        p = jnp.where(mask, p, 0.0)
        denom = jnp.sum(p, axis=1, keepdims=True)

        f_h = f_all[:, hd * out_dim:(hd + 1) * out_dim]           # (N, D)
        agg = jnp.dot(p.astype(jnp.bfloat16), f_h.astype(jnp.bfloat16),
                      preferred_element_type=jnp.float32)         # (N, D)
        inv = pl.reciprocal(jnp.maximum(denom, 1e-30), approx=True)
        head_outs.append(agg * inv)

    z_m = jnp.concatenate(head_outs, axis=-1) + b_ref[...]        # (N, H*D)

    # ------------- semantic attention: per-metapath score + online softmax ----
    hm = jnp.tanh(jnp.dot(z_m, w1_ref[...],
                          preferred_element_type=jnp.float32) + b1_ref[...])
    col = jnp.sum(hm, axis=0, keepdims=True)                      # (1, Hs)
    s = jnp.sum(col * w2_ref[...], axis=1, keepdims=True) * (1.0 / n)   # (1, 1)

    m_new = jnp.maximum(m_sc[...], s)
    scale = jnp.exp(m_sc[...] - m_new)
    p_m = jnp.exp(s - m_new)
    l_sc[...] = scale * l_sc[...] + p_m
    acc_sc[...] = scale * acc_sc[...] + p_m * z_m
    m_sc[...] = m_new

    @pl.when(m == pl.num_programs(0) - 1)
    def _():
        o_ref[...] = acc_sc[...] / l_sc[...]


# ------------------------------- wrapper --------------------------------------
def han_layer_forward(h, W, attn_l, attn_r, bias, adj, w1, b1, w2):
    M, H, F_in, D = W.shape
    N = h.shape[0]
    HD = H * D
    Hs = w1.shape[1]

    # host-side packing (cheap, one-time): merge heads / pack attn vectors
    h_bf = h.astype(jnp.bfloat16)
    W_all = jnp.transpose(W, (0, 2, 1, 3)).reshape(M, F_in, HD).astype(jnp.bfloat16)
    eyeH = jnp.eye(H, dtype=jnp.float32)
    R = (attn_r[:, :, :, None] * eyeH[None, :, None, :]).reshape(M, HD, H)
    L = (eyeH[None, :, :, None] * attn_l[:, None, :, :]).reshape(M, H, HD)
    bias_all = bias.reshape(M, 1, HD)
    adj_i8 = (adj > 0).astype(jnp.int8)
    w2_row = w2.reshape(1, Hs)

    kernel = functools.partial(han_kernel, heads=H, out_dim=D)
    return pl.pallas_call(
        kernel,
        out_shape=jax.ShapeDtypeStruct((N, HD), jnp.float32),
        grid=(M,),
        in_specs=[
            pl.BlockSpec((N, F_in), lambda m: (0, 0)),
            pl.BlockSpec((None, F_in, HD), lambda m: (m, 0, 0)),
            pl.BlockSpec((None, HD, H), lambda m: (m, 0, 0)),
            pl.BlockSpec((None, H, HD), lambda m: (m, 0, 0)),
            pl.BlockSpec((None, 1, HD), lambda m: (m, 0, 0)),
            pl.BlockSpec((None, N, N), lambda m: (m, 0, 0)),
            pl.BlockSpec((HD, Hs), lambda m: (0, 0)),
            pl.BlockSpec((1, Hs), lambda m: (0, 0)),
            pl.BlockSpec((1, Hs), lambda m: (0, 0)),
        ],
        out_specs=pl.BlockSpec((N, HD), lambda m: (0, 0)),
        scratch_shapes=[
            pltpu.VMEM((1, 1), jnp.float32),   # running max of metapath scores
            pltpu.VMEM((1, 1), jnp.float32),   # running softmax denominator
            pltpu.VMEM((N, HD), jnp.float32),  # running weighted-sum of z
        ],
        # metapath axis carries the online semantic-attention state -> sequential
        compiler_params=pltpu.CompilerParams(dimension_semantics=("arbitrary",)),
    )(h_bf, W_all, R, L, bias_all, adj_i8, w1, b1, w2_row)


# ------------------------------ reference -------------------------------------
def reference(h, W, attn_l, attn_r, bias, adj, w1, b1, w2):
    M, H, F_in, D = W.shape
    embs = []
    for m in range(M):
        heads_out = []
        for hd in range(H):
            f = h @ W[m, hd]
            el = (f * attn_l[m, hd]).sum(-1)
            er = (f * attn_r[m, hd]).sum(-1)
            e = er[:, None] + el[None, :]
            e = jnp.where(e > 0, e, NEG_SLOPE * e)
            mask = adj[m] > 0
            e = jnp.where(mask, e, -1e30)
            p = jax.nn.softmax(e, axis=1)
            p = jnp.where(mask, p, 0.0)
            heads_out.append(p @ f + bias[m, hd])
        embs.append(jnp.concatenate(heads_out, axis=-1))
    z = jnp.stack(embs, axis=1)                      # (N, M, Dz)
    s = jnp.tanh(z @ w1 + b1) @ w2                   # (N, M, 1)
    w = s.mean(0)                                    # (M, 1)
    beta = jax.nn.softmax(w, axis=0)                 # (M, 1)
    return (beta[None] * z).sum(1)                   # (N, Dz)


# --------------------------------- main ----------------------------------------
if __name__ == "__main__":
    N, F_IN, OUT, HEADS, M, HID = 64, 32, 16, 2, 3, 64   # HID: SemanticAttention hidden
    DZ = OUT * HEADS

    key = jax.random.PRNGKey(0)
    ks = jax.random.split(key, 9)

    h = jax.random.normal(ks[0], (N, F_IN), jnp.float32)
    W = jax.random.normal(ks[1], (M, HEADS, F_IN, OUT), jnp.float32) * 0.1
    attn_l = jax.random.normal(ks[2], (M, HEADS, OUT), jnp.float32) * 0.1
    attn_r = jax.random.normal(ks[3], (M, HEADS, OUT), jnp.float32) * 0.1
    bias = jax.random.normal(ks[4], (M, HEADS, OUT), jnp.float32) * 0.01

    # bidirected random metapath graphs with self-loops (no zero in-degree)
    a = (jax.random.uniform(ks[5], (M, N, N)) < 0.15).astype(jnp.float32)
    adj = jnp.maximum(a, jnp.transpose(a, (0, 2, 1)))
    adj = jnp.maximum(adj, jnp.eye(N, dtype=jnp.float32)[None])

    w1 = jax.random.normal(ks[6], (DZ, HID), jnp.float32) * 0.1
    b1 = jnp.zeros((1, HID), jnp.float32)
    w2 = jax.random.normal(ks[7], (HID, 1), jnp.float32) * 0.1

    out = han_layer_forward(h, W, attn_l, attn_r, bias, adj, w1, b1, w2)
    out = jax.block_until_ready(out)

    with jax.default_matmul_precision("highest"):
        ref = reference(h, W, attn_l, attn_r, bias, adj, w1, b1, w2)
    err = float(jnp.max(jnp.abs(out - ref)))
    assert out.shape == (N, DZ), out.shape
    # bf16 MXU inputs (per perf guidance) vs. f32-"highest" reference
    assert err < 2e-2, f"max abs err {err}"

    print("KERNEL_OK")
</pallas_src>

<mosaic_0001>
module attributes {stable_mosaic.version = 11 : i64} {
  func.func @han_kernel(%arg0: i32, %arg1: memref<64x32xbf16, #tpu.memory_space<vmem>>, %arg2: memref<1x32x32xbf16, #tpu.memory_space<vmem>>, %arg3: memref<1x32x2xf32, #tpu.memory_space<vmem>>, %arg4: memref<1x2x32xf32, #tpu.memory_space<vmem>>, %arg5: memref<1x1x32xf32, #tpu.memory_space<vmem>>, %arg6: memref<1x64x64xi8, #tpu.memory_space<vmem>>, %arg7: memref<32x64xf32, #tpu.memory_space<vmem>>, %arg8: memref<1x64xf32, #tpu.memory_space<vmem>>, %arg9: memref<1x64xf32, #tpu.memory_space<vmem>>, %arg10: memref<64x32xf32, #tpu.memory_space<vmem>>, %arg11: memref<1x1xf32, #tpu.memory_space<vmem>>, %arg12: memref<1x1xf32, #tpu.memory_space<vmem>>, %arg13: memref<64x32xf32, #tpu.memory_space<vmem>>) attributes {dimension_semantics = [#tpu.dimension_semantics<arbitrary>], iteration_bounds = array<i64: 3>, scalar_prefetch = 0 : i64, scratch_operands = 3 : i64, tpu.core_type = #tpu.core_type<tc>, window_params = [{pipeline_mode = #tpu.pipeline_mode<synchronous>, transform_indices = @transform_0, window_bounds = array<i64: 64, 32>}, {transform_indices = @transform_1, window_bounds = array<i64: 1, 32, 32>}, {transform_indices = @transform_2, window_bounds = array<i64: 1, 32, 2>}, {transform_indices = @transform_3, window_bounds = array<i64: 1, 2, 32>}, {transform_indices = @transform_4, window_bounds = array<i64: 1, 1, 32>}, {transform_indices = @transform_5, window_bounds = array<i64: 1, 64, 64>}, {pipeline_mode = #tpu.pipeline_mode<synchronous>, transform_indices = @transform_6, window_bounds = array<i64: 32, 64>}, {pipeline_mode = #tpu.pipeline_mode<synchronous>, transform_indices = @transform_7, window_bounds = array<i64: 1, 64>}, {pipeline_mode = #tpu.pipeline_mode<synchronous>, transform_indices = @transform_8, window_bounds = array<i64: 1, 64>}, {pipeline_mode = #tpu.pipeline_mode<synchronous>, transform_indices = @transform_9, window_bounds = array<i64: 64, 32>}]} {
    %c0_i32 = arith.constant 0 : i32
    %0 = arith.cmpi eq, %arg0, %c0_i32 : i32
    %1 = arith.extui %0 : i1 to i32
    %c0_i32_0 = arith.constant 0 : i32
    %2 = arith.cmpi ne, %1, %c0_i32_0 : i32
    scf.if %2 {
      %cst_61 = arith.constant -1.000000e+30 : f32
      %119 = vector.broadcast %cst_61 : f32 to vector<1x1xf32>
      %c0_62 = arith.constant 0 : index
      %c0_63 = arith.constant 0 : index
      %120 = vector.load %arg11[%c0_62, %c0_63] : memref<1x1xf32, #tpu.memory_space<vmem>>, vector<1x1xf32>
      tpu.vector_store %arg11[%c0_62, %c0_63], %119 {strides = array<i32>} : memref<1x1xf32, #tpu.memory_space<vmem>>, vector<1x1xf32>,
      %cst_64 = arith.constant 0.000000e+00 : f32
      %121 = vector.broadcast %cst_64 : f32 to vector<1x1xf32>
      %c0_65 = arith.constant 0 : index
      %c0_66 = arith.constant 0 : index
      %122 = vector.load %arg12[%c0_65, %c0_66] : memref<1x1xf32, #tpu.memory_space<vmem>>, vector<1x1xf32>
      tpu.vector_store %arg12[%c0_65, %c0_66], %121 {strides = array<i32>} : memref<1x1xf32, #tpu.memory_space<vmem>>, vector<1x1xf32>,
      %cst_67 = arith.constant 0.000000e+00 : f32
      %123 = vector.broadcast %cst_67 : f32 to vector<64x32xf32>
      %c0_68 = arith.constant 0 : index
      %c0_69 = arith.constant 0 : index
      %124 = vector.load %arg13[%c0_68, %c0_69] : memref<64x32xf32, #tpu.memory_space<vmem>>, vector<64x32xf32>
      tpu.vector_store %arg13[%c0_68, %c0_69], %123 {strides = array<i32>} : memref<64x32xf32, #tpu.memory_space<vmem>>, vector<64x32xf32>,
    } else {
    }
    %c0 = arith.constant 0 : index
    %c0_1 = arith.constant 0 : index
    %3 = vector.load %arg1[%c0, %c0_1] : memref<64x32xbf16, #tpu.memory_space<vmem>>, vector<64x32xbf16>
    %c0_2 = arith.constant 0 : index
    %c0_3 = arith.constant 0 : index
    %c0_4 = arith.constant 0 : index
    %4 = vector.load %arg2[%c0_2, %c0_3, %c0_4] : memref<1x32x32xbf16, #tpu.memory_space<vmem>>, vector<1x32x32xbf16>
    %5 = vector.shape_cast %4 : vector<1x32x32xbf16> to vector<32x32xbf16>
    %cst = arith.constant dense<0.000000e+00> : vector<64x32xf32>
    %6 = tpu.matmul %3, %5, %cst {dimension_numbers = #tpu.dot_dimension_numbers<[1], [0], [0], [1], [0, 0, 1, 1], [], []>} : vector<64x32xbf16>, vector<32x32xbf16>, vector<64x32xf32> -> vector<64x32xf32>
    %c0_5 = arith.constant 0 : index
    %c0_6 = arith.constant 0 : index
    %c0_7 = arith.constant 0 : index
    %7 = vector.load %arg3[%c0_5, %c0_6, %c0_7] : memref<1x32x2xf32, #tpu.memory_space<vmem>>, vector<1x32x2xf32>
    %8 = vector.shape_cast %7 : vector<1x32x2xf32> to vector<32x2xf32>
    %cst_8 = arith.constant dense<0.000000e+00> : vector<64x2xf32>
    %9 = tpu.matmul %6, %8, %cst_8 {dimension_numbers = #tpu.dot_dimension_numbers<[1], [0], [0], [1], [0, 0, 1, 1], [], []>} : vector<64x32xf32>, vector<32x2xf32>, vector<64x2xf32> -> vector<64x2xf32>
    %c0_9 = arith.constant 0 : index
    %c0_10 = arith.constant 0 : index
    %c0_11 = arith.constant 0 : index
    %10 = vector.load %arg4[%c0_9, %c0_10, %c0_11] : memref<1x2x32xf32, #tpu.memory_space<vmem>>, vector<1x2x32xf32>
    %11 = vector.shape_cast %10 : vector<1x2x32xf32> to vector<2x32xf32>
    %cst_12 = arith.constant dense<0.000000e+00> : vector<2x64xf32>
    %12 = tpu.matmul %11, %6, %cst_12 {dimension_numbers = #tpu.dot_dimension_numbers<[1], [1], [0], [0], [0, 0, 1, 0], [], []>} : vector<2x32xf32>, vector<64x32xf32>, vector<2x64xf32> -> vector<2x64xf32>
    %c0_13 = arith.constant 0 : index
    %c0_14 = arith.constant 0 : index
    %c0_15 = arith.constant 0 : index
    %13 = vector.load %arg6[%c0_13, %c0_14, %c0_15] : memref<1x64x64xi8, #tpu.memory_space<vmem>>, vector<1x64x64xi8>
    %14 = vector.shape_cast %13 : vector<1x64x64xi8> to vector<64x64xi8>
    %15 = arith.sitofp %14 : vector<64x64xi8> to vector<64x64xf32>
    %cst_16 = arith.constant 0.000000e+00 : f32
    %16 = vector.broadcast %cst_16 : f32 to vector<64x64xf32>
    %17 = arith.cmpf ogt, %15, %16 : vector<64x64xf32>
    %18 = vector.extract_strided_slice %9 {offsets = [0, 0], sizes = [64, 1], strides = [1, 1]} : vector<64x2xf32> to vector<64x1xf32>
    %19 = vector.extract_strided_slice %12 {offsets = [0, 0], sizes = [1, 64], strides = [1, 1]} : vector<2x64xf32> to vector<1x64xf32>
    %20 = vector.broadcast %18 : vector<64x1xf32> to vector<64x64xf32>
    %21 = vector.broadcast %19 : vector<1x64xf32> to vector<64x64xf32>
    %22 = arith.addf %20, %21 : vector<64x64xf32>
    %cst_17 = arith.constant 0.000000e+00 : f32
    %23 = vector.broadcast %cst_17 : f32 to vector<64x64xf32>
    %24 = arith.cmpf ogt, %22, %23 : vector<64x64xf32>
    %cst_18 = arith.constant 2.000000e-01 : f32
    %25 = vector.broadcast %cst_18 : f32 to vector<64x64xf32>
    %26 = arith.mulf %25, %22 : vector<64x64xf32>
    %27 = arith.select %24, %22, %26 : vector<64x64xi1>, vector<64x64xf32>
    %cst_19 = arith.constant -1.000000e+30 : f32
    %28 = vector.broadcast %cst_19 : f32 to vector<64x64xf32>
    %29 = arith.select %17, %27, %28 : vector<64x64xi1>, vector<64x64xf32>
    %cst_20 = arith.constant dense<0xFF800000> : vector<64xf32>
    %30 = vector.multi_reduction <maximumf>, %29, %cst_20 [1] : vector<64x64xf32> to vector<64xf32>
    %31 = vector.shape_cast %30 : vector<64xf32> to vector<64x1xf32>
    %32 = vector.broadcast %31 : vector<64x1xf32> to vector<64x64xf32>
    %33 = arith.subf %29, %32 : vector<64x64xf32>
    %34 = math.exp %33 : vector<64x64xf32>
    %cst_21 = arith.constant 0.000000e+00 : f32
    %35 = vector.broadcast %cst_21 : f32 to vector<64x64xf32>
    %36 = arith.select %17, %34, %35 : vector<64x64xi1>, vector<64x64xf32>
    %cst_22 = arith.constant dense<0.000000e+00> : vector<64xf32>
    %37 = vector.multi_reduction <add>, %36, %cst_22 [1] : vector<64x64xf32> to vector<64xf32>
    %38 = vector.shape_cast %37 : vector<64xf32> to vector<64x1xf32>
    %39 = vector.extract_strided_slice %6 {offsets = [0, 0], sizes = [64, 16], strides = [1, 1]} : vector<64x32xf32> to vector<64x16xf32>
    %40 = arith.truncf %36 : vector<64x64xf32> to vector<64x64xbf16>
    %41 = arith.truncf %39 : vector<64x16xf32> to vector<64x16xbf16>
    %cst_23 = arith.constant dense<0.000000e+00> : vector<64x16xf32>
    %42 = tpu.matmul %40, %41, %cst_23 {dimension_numbers = #tpu.dot_dimension_numbers<[1], [0], [0], [1], [0, 0, 1, 1], [], []>} : vector<64x64xbf16>, vector<64x16xbf16>, vector<64x16xf32> -> vector<64x16xf32>
    %cst_24 = arith.constant 1.000000e-30 : f32
    %43 = vector.broadcast %cst_24 : f32 to vector<64x1xf32>
    %44 = arith.maximumf %38, %43 : vector<64x1xf32>
    %45 = tpu.reciprocal %44 {approx = true} : vector<64x1xf32> -> vector<64x1xf32>
    %46 = vector.broadcast %45 : vector<64x1xf32> to vector<64x16xf32>
    %47 = arith.mulf %42, %46 : vector<64x16xf32>
    %48 = vector.extract_strided_slice %9 {offsets = [0, 1], sizes = [64, 1], strides = [1, 1]} : vector<64x2xf32> to vector<64x1xf32>
    %49 = vector.extract_strided_slice %12 {offsets = [1, 0], sizes = [1, 64], strides = [1, 1]} : vector<2x64xf32> to vector<1x64xf32>
    %50 = vector.broadcast %48 : vector<64x1xf32> to vector<64x64xf32>
    %51 = vector.broadcast %49 : vector<1x64xf32> to vector<64x64xf32>
    %52 = arith.addf %50, %51 : vector<64x64xf32>
    %cst_25 = arith.constant 0.000000e+00 : f32
    %53 = vector.broadcast %cst_25 : f32 to vector<64x64xf32>
    %54 = arith.cmpf ogt, %52, %53 : vector<64x64xf32>
    %cst_26 = arith.constant 2.000000e-01 : f32
    %55 = vector.broadcast %cst_26 : f32 to vector<64x64xf32>
    %56 = arith.mulf %55, %52 : vector<64x64xf32>
    %57 = arith.select %54, %52, %56 : vector<64x64xi1>, vector<64x64xf32>
    %cst_27 = arith.constant -1.000000e+30 : f32
    %58 = vector.broadcast %cst_27 : f32 to vector<64x64xf32>
    %59 = arith.select %17, %57, %58 : vector<64x64xi1>, vector<64x64xf32>
    %cst_28 = arith.constant dense<0xFF800000> : vector<64xf32>
    %60 = vector.multi_reduction <maximumf>, %59, %cst_28 [1] : vector<64x64xf32> to vector<64xf32>
    %61 = vector.shape_cast %60 : vector<64xf32> to vector<64x1xf32>
    %62 = vector.broadcast %61 : vector<64x1xf32> to vector<64x64xf32>
    %63 = arith.subf %59, %62 : vector<64x64xf32>
    %64 = math.exp %63 : vector<64x64xf32>
    %cst_29 = arith.constant 0.000000e+00 : f32
    %65 = vector.broadcast %cst_29 : f32 to vector<64x64xf32>
    %66 = arith.select %17, %64, %65 : vector<64x64xi1>, vector<64x64xf32>
    %cst_30 = arith.constant dense<0.000000e+00> : vector<64xf32>
    %67 = vector.multi_reduction <add>, %66, %cst_30 [1] : vector<64x64xf32> to vector<64xf32>
    %68 = vector.shape_cast %67 : vector<64xf32> to vector<64x1xf32>
    %69 = vector.extract_strided_slice %6 {offsets = [0, 16], sizes = [64, 16], strides = [1, 1]} : vector<64x32xf32> to vector<64x16xf32>
    %70 = arith.truncf %66 : vector<64x64xf32> to vector<64x64xbf16>
    %71 = arith.truncf %69 : vector<64x16xf32> to vector<64x16xbf16>
    %cst_31 = arith.constant dense<0.000000e+00> : vector<64x16xf32>
    %72 = tpu.matmul %70, %71, %cst_31 {dimension_numbers = #tpu.dot_dimension_numbers<[1], [0], [0], [1], [0, 0, 1, 1], [], []>} : vector<64x64xbf16>, vector<64x16xbf16>, vector<64x16xf32> -> vector<64x16xf32>
    %cst_32 = arith.constant 1.000000e-30 : f32
    %73 = vector.broadcast %cst_32 : f32 to vector<64x1xf32>
    %74 = arith.maximumf %68, %73 : vector<64x1xf32>
    %75 = tpu.reciprocal %74 {approx = true} : vector<64x1xf32> -> vector<64x1xf32>
    %76 = vector.broadcast %75 : vector<64x1xf32> to vector<64x16xf32>
    %77 = arith.mulf %72, %76 : vector<64x16xf32>
    %78 = tpu.concatenate %47, %77 in 1 : vector<64x16xf32>, vector<64x16xf32> -> vector<64x32xf32>
    %c0_33 = arith.constant 0 : index
    %c0_34 = arith.constant 0 : index
    %c0_35 = arith.constant 0 : index
    %79 = vector.load %arg5[%c0_33, %c0_34, %c0_35] : memref<1x1x32xf32, #tpu.memory_space<vmem>>, vector<1x1x32xf32>
    %80 = vector.shape_cast %79 : vector<1x1x32xf32> to vector<1x32xf32>
    %81 = vector.broadcast %80 : vector<1x32xf32> to vector<64x32xf32>
    %82 = arith.addf %78, %81 : vector<64x32xf32>
    %c0_36 = arith.constant 0 : index
    %c0_37 = arith.constant 0 : index
    %83 = vector.load %arg7[%c0_36, %c0_37] : memref<32x64xf32, #tpu.memory_space<vmem>>, vector<32x64xf32>
    %cst_38 = arith.constant dense<0.000000e+00> : vector<64x64xf32>
    %84 = tpu.matmul %82, %83, %cst_38 {dimension_numbers = #tpu.dot_dimension_numbers<[1], [0], [0], [1], [0, 0, 1, 1], [], []>} : vector<64x32xf32>, vector<32x64xf32>, vector<64x64xf32> -> vector<64x64xf32>
    %c0_39 = arith.constant 0 : index
    %c0_40 = arith.constant 0 : index
    %85 = vector.load %arg8[%c0_39, %c0_40] : memref<1x64xf32, #tpu.memory_space<vmem>>, vector<1x64xf32>
    %86 = vector.broadcast %85 : vector<1x64xf32> to vector<64x64xf32>
    %87 = arith.addf %84, %86 : vector<64x64xf32>
    %88 = math.tanh %87 : vector<64x64xf32>
    %cst_41 = arith.constant dense<0.000000e+00> : vector<64xf32>
    %89 = vector.multi_reduction <add>, %88, %cst_41 [0] : vector<64x64xf32> to vector<64xf32>
    %90 = vector.shape_cast %89 : vector<64xf32> to vector<1x64xf32>
    %c0_42 = arith.constant 0 : index
    %c0_43 = arith.constant 0 : index
    %91 = vector.load %arg9[%c0_42, %c0_43] : memref<1x64xf32, #tpu.memory_space<vmem>>, vector<1x64xf32>
    %92 = arith.mulf %90, %91 : vector<1x64xf32>
    %cst_44 = arith.constant dense<0.000000e+00> : vector<1xf32>
    %93 = vector.multi_reduction <add>, %92, %cst_44 [1] : vector<1x64xf32> to vector<1xf32>
    %94 = vector.shape_cast %93 : vector<1xf32> to vector<1x1xf32>
    %cst_45 = arith.constant 1.562500e-02 : f32
    %95 = vector.broadcast %cst_45 : f32 to vector<1x1xf32>
    %96 = arith.mulf %94, %95 : vector<1x1xf32>
    %c0_46 = arith.constant 0 : index
    %c0_47 = arith.constant 0 : index
    %97 = vector.load %arg11[%c0_46, %c0_47] : memref<1x1xf32, #tpu.memory_space<vmem>>, vector<1x1xf32>
    %98 = arith.maximumf %97, %96 : vector<1x1xf32>
    %c0_48 = arith.constant 0 : index
    %c0_49 = arith.constant 0 : index
    %99 = vector.load %arg11[%c0_48, %c0_49] : memref<1x1xf32, #tpu.memory_space<vmem>>, vector<1x1xf32>
    %100 = arith.subf %99, %98 : vector<1x1xf32>
    %101 = math.exp %100 : vector<1x1xf32>
    %102 = arith.subf %96, %98 : vector<1x1xf32>
    %103 = math.exp %102 : vector<1x1xf32>
    %c0_50 = arith.constant 0 : index
    %c0_51 = arith.constant 0 : index
    %104 = vector.load %arg12[%c0_50, %c0_51] : memref<1x1xf32, #tpu.memory_space<vmem>>, vector<1x1xf32>
    %105 = arith.mulf %101, %104 : vector<1x1xf32>
    %106 = arith.addf %105, %103 : vector<1x1xf32>
    %c0_52 = arith.constant 0 : index
    %c0_53 = arith.constant 0 : index
    %107 = vector.load %arg12[%c0_52, %c0_53] : memref<1x1xf32, #tpu.memory_space<vmem>>, vector<1x1xf32>
    tpu.vector_store %arg12[%c0_52, %c0_53], %106 {strides = array<i32>} : memref<1x1xf32, #tpu.memory_space<vmem>>, vector<1x1xf32>,
    %c0_54 = arith.constant 0 : index
    %c0_55 = arith.constant 0 : index
    %108 = vector.load %arg13[%c0_54, %c0_55] : memref<64x32xf32, #tpu.memory_space<vmem>>, vector<64x32xf32>
    %109 = vector.broadcast %101 : vector<1x1xf32> to vector<64x32xf32>
    %110 = arith.mulf %109, %108 : vector<64x32xf32>
    %111 = vector.broadcast %103 : vector<1x1xf32> to vector<64x32xf32>
    %112 = arith.mulf %111, %82 : vector<64x32xf32>
    %113 = arith.addf %110, %112 : vector<64x32xf32>
    %c0_56 = arith.constant 0 : index
    %c0_57 = arith.constant 0 : index
    %114 = vector.load %arg13[%c0_56, %c0_57] : memref<64x32xf32, #tpu.memory_space<vmem>>, vector<64x32xf32>
    tpu.vector_store %arg13[%c0_56, %c0_57], %113 {strides = array<i32>} : memref<64x32xf32, #tpu.memory_space<vmem>>, vector<64x32xf32>,
    %c0_58 = arith.constant 0 : index
    %c0_59 = arith.constant 0 : index
    %115 = vector.load %arg11[%c0_58, %c0_59] : memref<1x1xf32, #tpu.memory_space<vmem>>, vector<1x1xf32>
    tpu.vector_store %arg11[%c0_58, %c0_59], %98 {strides = array<i32>} : memref<1x1xf32, #tpu.memory_space<vmem>>, vector<1x1xf32>,
    %c2_i32 = arith.constant 2 : i32
    %116 = arith.cmpi eq, %arg0, %c2_i32 : i32
    %117 = arith.extui %116 : i1 to i32
    %c0_i32_60 = arith.constant 0 : i32
    %118 = arith.cmpi ne, %117, %c0_i32_60 : i32
    scf.if %118 {
      %c0_61 = arith.constant 0 : index
      %c0_62 = arith.constant 0 : index
      %119 = vector.load %arg13[%c0_61, %c0_62] : memref<64x32xf32, #tpu.memory_space<vmem>>, vector<64x32xf32>
      %c0_63 = arith.constant 0 : index
      %c0_64 = arith.constant 0 : index
      %120 = vector.load %arg12[%c0_63, %c0_64] : memref<1x1xf32, #tpu.memory_space<vmem>>, vector<1x1xf32>
      %121 = vector.broadcast %120 : vector<1x1xf32> to vector<64x32xf32>
      %122 = arith.divf %119, %121 : vector<64x32xf32>
      %c0_65 = arith.constant 0 : index
      %c0_66 = arith.constant 0 : index
      %123 = vector.load %arg10[%c0_65, %c0_66] : memref<64x32xf32, #tpu.memory_space<vmem>>, vector<64x32xf32>
      tpu.vector_store %arg10[%c0_65, %c0_66], %122 {strides = array<i32>} : memref<64x32xf32, #tpu.memory_space<vmem>>, vector<64x32xf32>,
    } else {
    }
    return
  }
  func.func @transform_0(%arg0: i32) -> (i32, i32) {
    %c0_i32 = arith.constant 0 : i32
    %c0_i32_0 = arith.constant 0 : i32
    %c0_i32_1 = arith.constant 0 : i32
    return %c0_i32, %c0_i32_0 : i32, i32
  }
  func.func @transform_1(%arg0: i32) -> (i32, i32, i32) {
    %c0_i32 = arith.constant 0 : i32
    %c0_i32_0 = arith.constant 0 : i32
    %c0_i32_1 = arith.constant 0 : i32
    return %arg0, %c0_i32, %c0_i32_0 : i32, i32, i32
  }
  func.func @transform_2(%arg0: i32) -> (i32, i32, i32) {
    %c0_i32 = arith.constant 0 : i32
    %c0_i32_0 = arith.constant 0 : i32
    %c0_i32_1 = arith.constant 0 : i32
    return %arg0, %c0_i32, %c0_i32_0 : i32, i32, i32
  }
  func.func @transform_3(%arg0: i32) -> (i32, i32, i32) {
    %c0_i32 = arith.constant 0 : i32
    %c0_i32_0 = arith.constant 0 : i32
    %c0_i32_1 = arith.constant 0 : i32
    return %arg0, %c0_i32, %c0_i32_0 : i32, i32, i32
  }
  func.func @transform_4(%arg0: i32) -> (i32, i32, i32) {
    %c0_i32 = arith.constant 0 : i32
    %c0_i32_0 = arith.constant 0 : i32
    %c0_i32_1 = arith.constant 0 : i32
    return %arg0, %c0_i32, %c0_i32_0 : i32, i32, i32
  }
  func.func @transform_5(%arg0: i32) -> (i32, i32, i32) {
    %c0_i32 = arith.constant 0 : i32
    %c0_i32_0 = arith.constant 0 : i32
    %c0_i32_1 = arith.constant 0 : i32
    return %arg0, %c0_i32, %c0_i32_0 : i32, i32, i32
  }
  func.func @transform_6(%arg0: i32) -> (i32, i32) {
    %c0_i32 = arith.constant 0 : i32
    %c0_i32_0 = arith.constant 0 : i32
    %c0_i32_1 = arith.constant 0 : i32
    return %c0_i32, %c0_i32_0 : i32, i32
  }
  func.func @transform_7(%arg0: i32) -> (i32, i32) {
    %c0_i32 = arith.constant 0 : i32
    %c0_i32_0 = arith.constant 0 : i32
    %c0_i32_1 = arith.constant 0 : i32
    return %c0_i32, %c0_i32_0 : i32, i32
  }
  func.func @transform_8(%arg0: i32) -> (i32, i32) {
    %c0_i32 = arith.constant 0 : i32
    %c0_i32_0 = arith.constant 0 : i32
    %c0_i32_1 = arith.constant 0 : i32
    return %c0_i32, %c0_i32_0 : i32, i32
  }
  func.func @transform_9(%arg0: i32) -> (i32, i32) {
    %c0_i32 = arith.constant 0 : i32
    %c0_i32_0 = arith.constant 0 : i32
    %c0_i32_1 = arith.constant 0 : i32
    return %c0_i32, %c0_i32_0 : i32, i32
  }
}

</mosaic_0001>

<bundles_post_ra>
// kernel: tpu_custom_call.1
= control target key start
LH: loop header
LB: loop body
LE: loop exit
PB: predicated region body
PF: predicated region fallthrough
CT: control target
= control target key end

     0   :  { %s2166_s30 = smov 0   ;;  %s2689_s0 = inlined_call_operand.vmem [shape: bf16[64,32], index: 0, kind: input, shape index: {}]   ;;  %s2690_s1 = inlined_call_operand.vmem [shape: bf16[3,32,32], index: 1, kind: input, shape index: {}]   ;;  %s2691_s2 = inlined_call_operand.vmem [shape: f32[3,32,2], index: 2, kind: input, shape index: {}]   ;;  %s2692_s3 = inlined_call_operand.vmem [shape: f32[3,2,32], index: 3, kind: input, shape index: {}]   ;;  %s2693_s4 = inlined_call_operand.vmem [shape: f32[3,1,32], index: 4, kind: input, shape index: {}]   ;;  %s2694_s5 = inlined_call_operand.vmem [shape: s8[3,64,64], index: 5, kind: input, shape index: {}]   ;;  %s2695_s6 = inlined_call_operand.vmem [shape: f32[32,64], index: 6, kind: input, shape index: {}]   ;;  %s2696_s7 = inlined_call_operand.vmem [shape: f32[1,64], index: 7, kind: input, shape index: {}]   ;;  %s2697_s8 = inlined_call_operand.vmem [shape: f32[1,64], index: 8, kind: input, shape index: {}]   ;;  %s2698_s9 = inlined_call_operand.vmem [shape: f32[64,32], index: 9, kind: output, shape index: {}]  }
   0x1 LB: > { %s2172_s10 = sadd.s32 4294967295, %s2104_s30   ;;  %p1726_p0 = scmp.ge.s32.totalorder %s2104_s30, 1  ;;  %s2104_s30 = sphi %s2166_s30, %s19_s30  }
   0x2   : > { %p319_p1 = scmp.lt.s32.totalorder %s2104_s30, 4 }
   0x4   : > { %p320_p2 = pnand %p1726_p0, %p319_p1 }
   0x5   : > { %p367_p3 = scmp.lt.s32.totalorder (!%p320_p2), %s2172_s10, 2  ;;  %p1734_p4 = scmp.ne.s32.totalorder (!%p320_p2), %s2172_s10, 0 }
   0x6   : > { %323 = sbr.rel (%p320_p2) target bundleno = 1798 (0x706), region = 56 }
   0xd   : > { %s2178_s11 = scalar_select %p367_p3, %s2172_s10, 2 }
   0xe   : > { %393 = sbr.rel (%p1734_p4) target bundleno = 21 (0x15), region = 60  ;;  %vm394_vm0 = vcmask (!%p1734_p4), 0   ;;  %vm397_vm1 = vcmask (!%p1734_p4), 261120   ;;  %v2106_v0 = vmov (!%p1734_p4), -1e+30   ;;  %v2107_v1 = vmov (!%p1734_p4), 0.0  }
   0xf   : > { %s1784_s12 = sshll.u32 %s2178_s11, 4  ;;  %s1785_s13 = sshll.u32 %s2178_s11, 5  ;;  %395 = vst.msk [vmem:[#allocation2] sm:$0x1] (!%p1734_p4), %vm394_vm0, %v2106_v0  ;;  %396 = vst.msk [vmem:[#allocation3] sm:$0x1] (!%p1734_p4), %vm394_vm0, %v2107_v1 }
  0x10   : > { %s371_s16 = scalar_lea.vmem %s2690_s1, %s1784_s12  ;;  %s2188_s19 = scalar_lea.vmem %s2691_s2, %s1785_s13  ;;  %398 = vst.msk [vmem:[#allocation4] sm:$0xff] (!%p1734_p4), %vm397_vm1, %v2107_v1  ;;  %399 = vst.msk [vmem:[#allocation4 + $0x8] sm:$0xff] (!%p1734_p4), %vm397_vm1, %v2107_v1 }
  0x11   : > { %s1731_s20 = sshll.u32 %s2178_s11, 1  ;;  %s383_s23 = scalar_lea.vmem %s2693_s4, %s2178_s11  ;;  %400 = vst.msk [vmem:[#allocation4 + $0x10] sm:$0xff] (!%p1734_p4), %vm397_vm1, %v2107_v1  ;;  %401 = vst.msk [vmem:[#allocation4 + $0x18] sm:$0xff] (!%p1734_p4), %vm397_vm1, %v2107_v1 }
  0x12   : > { %s2198_s26 = scalar_lea.vmem %s2692_s3, %s1731_s20  ;;  %s2203_s29 = scalar_lea.vmem %s2694_s5, %s1784_s12  ;;  %402 = vst.msk [vmem:[#allocation4 + $0x20] sm:$0xff] (!%p1734_p4), %vm397_vm1, %v2107_v1  ;;  %403 = vst.msk [vmem:[#allocation4 + $0x28] sm:$0xff] (!%p1734_p4), %vm397_vm1, %v2107_v1 }
  0x13   : > { %404 = vst.msk [vmem:[#allocation4 + $0x30] sm:$0xff] (!%p1734_p4), %vm397_vm1, %v2107_v1  ;;  %405 = vst.msk [vmem:[#allocation4 + $0x38] sm:$0xff] (!%p1734_p4), %vm397_vm1, %v2107_v1 }
  0x15 PF: > { %v2005_v2 = vld [vmem:[%s371_s16] sm:$0xff]   ;;  %v2006_v3 = vld [vmem:[%s371_s16 + $0x8] sm:$0xff]   ;;  %vm450_vm2 = vcmask 261120   ;;  %v2009_v8 = vld [vmem:[%s2689_s0 + $0x10] sm:$0xff]   ;;  %v2108_v14 = vmov 0.0|0.0   ;;  %vm2109_vm3 = vmmov 0   ;;  %v801_v42 = vlaneseq }
  0x16   : > { %1842 = vmatprep.subr.bf16.mxu0 %v2005_v2  ;;  %v2007_v4 = vld [vmem:[%s2689_s0] sm:$0xff]   ;;  %v2008_v5 = vld [vmem:[%s2689_s0 + $0x8] sm:$0xff]   ;;  %v2010_v10 = vld [vmem:[%s2689_s0 + $0x18] sm:$0xff]   ;;  %v2110_v15 = vmov 0.0   ;;  %v2111_v30 = vmov 1   ;;  %v2112_v31 = vmov 0  }
  0x17   : > { %1843 = vmatpush3.bf16.msra.mxu0 %v2005_v2  ;;  %1846 = vmatprep.mubr.msk.bf16.mxu0 %vm450_vm2, %v2007_v4  ;;  %v528_v6 = vld [vmem:[%s2188_s19] sm:$0xff]  ;;  %v529_v7 = vld [vmem:[%s2188_s19 + $0x8] sm:$0xff]  ;;  %v530_v11 = vld [vmem:[%s2188_s19 + $0x10] sm:$0xff]  ;;  %v2270_v45 = vshrl.u32 %v801_v42, 7  ;;  %vm845_vm5 = vcmask 523264   ;;  %s2114_s12 = smov 16  }
  0x18   : > { %1844 = vmatprep.subr.bf16.mxu0 %v2006_v3  ;;  %v1945_v9 = vpack.c.bf16 %v529_v7, %v528_v6  ;;  %v531_v12 = vld [vmem:[%s2188_s19 + $0x18] sm:$0xff]  ;;  %vm2231_vm4 = vmpackc.low %vm450_vm2, %vm450_vm2  ;;  %v661_v29 = vld [vmem:[%s2198_s26] sm:$0x3]  ;;  %2001 = vset.pattern.permute.xlu0 %v2111_v30  ;;  %s2113_s19 = smov 112   ;;  %p1780_p5 = scmp.ne.s32.totalorder %s2172_s10, 2 }
  0x19   : > { %v1949_v13 = vpack.c.bf16 %v531_v12, %v530_v11  ;;  %2002 = vset.pattern.permute.xlu1 %v2112_v31  ;;  %v1069_v48 = vsub.s32 1, %v2270_v45  ;;  %v735_v50 = vld [vmem:[%s2203_s29] sm:$0xff]  ;;  %v803_v52 = vsub.s32 0, %v2270_v45 }
  0x1a   : > { %1946 = vmatprep.subr.bf16.mxu1 %v1945_v9  ;;  %v737_v55 = vunpack.c.0.s8 %v735_v50  ;;  %v738_v57 = vunpack.c.1.s8 %v735_v50  ;;  %v740_v63 = vunpack.c.3.s8 %v735_v50  ;;  %v739_v1 = vunpack.c.2.s8 %v735_v50 }
  0x1b   : > { %1845 = vmatpush3.bf16.msra.mxu0 %v2006_v3  ;;  %1948 = vmatpush3.bf16.msra.mxu1 %v1945_v9 }
  0x1c   : > { %1950 = vmatprep.subr.bf16.mxu1 %v1949_v13  ;;  %1953 = vmatprep.subr.bf16.mxu0 %v2108_v14  ;;  %v2288_v60 = vcvt.s32.f32 %v737_v55  ;;  %v2291_v0 = vcvt.s32.f32 %v738_v57  ;;  %v2301_v12 = vcvt.s32.f32 %v739_v1 }
  0x1e   : > { %1847 = vmatmul.mubr.msk.bf16.vlgmr.msra.gmra.mrb[0].mxu0 %vm450_vm2, %v2008_v5  ;;  %vm753_vm6 = vcmp.gt.f32.partialorder %v2288_v60, 0.0  ;;  %vm754_vm9 = vcmp.gt.f32.partialorder %v2291_v0, 0.0  ;;  %vm755_vm15 = vcmp.gt.f32.partialorder %v2301_v12, 0.0 }
  0x1f   : > { %1850 = vmatprep.mubr.msk.bf16.mxu0 %vm450_vm2, %v2009_v8  ;;  %1952 = vmatpush3.bf16.msra.mxu1 %v1949_v13 }
  0x26   : > { %1851 = vmatmul.mubr.msk.bf16.gmra.mrb[4].mxu0 %vm450_vm2, %v2010_v10  ;;  %v2298_v10 = vcvt.s32.f32 %v740_v63 }
  0x27   : > { %1890 = vmatprep.mubr.msk.f32.mxu0 %vm2109_vm3, %v2110_v15 }
  0x28   : > { %vm756_vm13 = vcmp.gt.f32.partialorder %v2298_v10, 0.0 }
  0xf1   : > { %v1848_v16 = vpop.f32.mrb[0].mxu0 }
  0xf2   : > { %v497_v17 = vpop.f32.mrb[1].mxu0 }
  0xf3   : > { %v1849_v18 = vpop.f32.mrb[2].mxu0  ;;  %1862 = vmatprep.mubr.msk.f32.mxu1 %vm450_vm2, %v497_v17 }
  0xf4   : > { %v2227_v19 = vpack.c.bf16 %v1849_v18, %v1848_v16  ;;  %v500_v20 = vpop.f32.mrb[3].mxu0 }
  0xf5   : > { %v2235_v22 = vpack.c.bf16 %v500_v20, %v497_v17  ;;  %1863 = vmatmul.mubr.msk.f32.vlgmr.msra.gmra.mrb[0].mxu1 %vm450_vm2, %v500_v20 }
  0xf6   : > { %1865 = vmatprep.mubr.msk.f32.mxu1 %vm450_vm2, %v1848_v16 }
  0xf7   : > { %1956 = vmatpush3.bf16.xpose.msk.msra.mxu0 %vm2231_vm4, %v2235_v22  ;;  %1893 = vmatprep.subr.bf16.mxu1 %v2235_v22 }
  0xf8   : > { %1894 = vmatpush3.bf16.msra.mxu1 %v2235_v22  ;;  %1957 = vmatprep.subr.bf16.mxu0 %v2108_v14 }
  0xf9   : > { %v1852_v23 = vpop.f32.mrb[4].mxu0  ;;  %1866 = vmatmul.mubr.msk.f32.gmra.mrb[2].mxu1 %vm450_vm2, %v1849_v18  ;;  %1895 = vmatprep.subr.bf16.mxu1 %v2227_v19 }
  0xfa   : > { %v513_v24 = vpop.f32.mrb[5].mxu0 }
  0xfb   : > { %v1853_v25 = vpop.f32.mrb[6].mxu0  ;;  %1868 = vmatprep.mubr.msk.f32.mxu1 %vm450_vm2, %v513_v24 }
  0xfc   : > { %v2247_v26 = vpack.c.bf16 %v1853_v25, %v1852_v23  ;;  %v516_v27 = vpop.f32.mrb[7].mxu0  ;;  %1896 = vmatpush3.bf16.msra.mxu1 %v2227_v19 }
  0xfd   : > { %v2250_v28 = vpack.c.bf16 %v516_v27, %v513_v24  ;;  %1869 = vmatmul.mubr.msk.f32.gmra.mrb[4].mxu1 %vm450_vm2, %v516_v27 }
  0xfe   : > { %1871 = vmatprep.mubr.msk.f32.mxu1 %vm450_vm2, %v1852_v23 }
  0xff   : > { %1960 = vmatpush3.bf16.xpose.msk.msra.mxu0 %vm2231_vm4, %v2227_v19  ;;  %1897 = vmatprep.subr.bf16.mxu1 %v2250_v28 }
 0x100   : > { %1898 = vmatpush3.bf16.msra.mxu1 %v2250_v28  ;;  %1961 = vmatprep.subr.bf16.mxu0 %v2108_v14 }
 0x101   : > { %1872 = vmatmul.mubr.msk.f32.gmra.mrb[6].mxu1 %vm450_vm2, %v1853_v25  ;;  %1899 = vmatprep.subr.bf16.mxu1 %v2247_v26 }
 0x104   : > { %1900 = vmatpush3.bf16.msra.mxu1 %v2247_v26 }
 0x107   : > { %1964 = vmatpush3.bf16.xpose.msk.msra.mxu0 %vm2231_vm4, %v2250_v28 }
 0x108   : > { %1965 = vmatprep.subr.bf16.mxu0 %v2108_v14 }
 0x10f   : > { %1968 = vmatpush3.bf16.xpose.msk.msra.mxu0 %vm2231_vm4, %v2247_v26 }
 0x116   : > { %1891 = vmatmul.mubr.msk.f32.vlgmr.msra.gmra.mrb[8].mxu0 %vm450_vm2, %v661_v29 }
 0x1c8   : > { %v1864_v32 = vpop.f32.mrb[0].mxu1 }
 0x1c9   : > { %v622_v33 = vpop.f32.mrb[1].mxu1 }
 0x1ca   : > { %1036 = vperm.xlu0 %2001, %v622_v33  }
 0x1cc   : > { %v1867_v34 = vpop.f32.mrb[2].mxu1 }
 0x1cd   : > { %778 = vperm.xlu1 %2002, %v1867_v34   ;;  %v632_v35 = vpop.f32.mrb[3].mxu1 }
 0x1ce   : > { %1048 = vperm.xlu0 %2001, %v1867_v34  }
 0x1d0   : > { %v1870_v36 = vpop.f32.mrb[4].mxu1 }
 0x1d1   : > { %773 = vperm.xlu1 %2002, %v632_v35   ;;  %v642_v37 = vpop.f32.mrb[5].mxu1 }
 0x1d2   : > { %1056 = vperm.xlu0 %2001, %v1870_v36  }
 0x1d4   : > { %v1873_v38 = vpop.f32.mrb[6].mxu1 }
 0x1d5   : > { %788 = vperm.xlu1 %2002, %v1870_v36   ;;  %v652_v39 = vpop.f32.mrb[7].mxu1 }
 0x1d6   : > { %1064 = vperm.xlu0 %2001, %v1873_v38  }
 0x1d9   : > { %798 = vperm.xlu1 %2002, %v1873_v38  }
 0x1da   : > { %2004 = vset.pattern.permute.xlu0 %v2112_v31  ;;  %v2317_v31 = vld [vmem:[%s2203_s29 + $0x8] sm:$0xff] }
 0x1db   : > { %763 = vperm.xlu0 %2004, %v622_v33   ;;  %v741_v34 = vunpack.c.0.s8 %v2317_v31 }
 0x1dd   : > { %2003 = vset.pattern.permute.xlu1 %v2111_v30 }
 0x1de   : > { %1040 = vperm.xlu1 %2003, %v1864_v32  }
 0x1df   : > { %768 = vperm.xlu0 %2004, %v1864_v32  }
 0x1e2   : > { %1044 = vperm.xlu1 %2003, %v632_v35  }
 0x1e3   : > { %783 = vperm.xlu0 %2004, %v642_v37  }
 0x1e6   : > { %1052 = vperm.xlu1 %2003, %v642_v37  }
 0x1e7   : > { %793 = vperm.xlu0 %2004, %v652_v39  }
 0x1e9   : > { %v731_v40 = vpop.f32.mrb[8].mxu0 }
 0x1ea   : > { %1060 = vperm.xlu1 %2003, %v652_v39   ;;  %v1892_v41 = vpop.f32.mrb[9].mxu0  ;;  %v2277_v53 = vrot.slane %v731_v40, %v1069_v48  ;;  %v2285_v58 = vrot.slane %v731_v40, %v803_v52  ;;  %v2343_v48 = vcvt.s32.f32 %v741_v34 }
 0x249   : > { %v1037_v43 = vpop.permute.xlu0 %1036 }
 0x24a   : > { %v1071_v59 = vadd.f32 %v2277_v53, %v1037_v43 }
 0x24c   : > { %v779_v44 = vpop.permute.xlu1 %778  ;;  %v1087_v2 = vmul.f32 0.2, %v1071_v59  ;;  %vm1079_vm7 = vcmp.gt.f32.partialorder %v1071_v59, 0.0 }
 0x24d   : > { %v1049_v46 = vpop.permute.xlu0 %1048  ;;  %v808_v4 = vadd.f32 %v2285_v58, %v779_v44  ;;  %v742_v44 = vunpack.c.1.s8 %v2317_v31 }
 0x24e   : > { %v1074_v13 = vadd.f32 %v2277_v53, %v1049_v46  ;;  %v1095_v16 = vsel %vm1079_vm7, %v1071_v59, %v1087_v2  ;;  %vm757_vm7 = vcmp.gt.f32.partialorder %v2343_v48, 0.0 }
 0x24f   : > { %v824_v17 = vmul.f32 0.2, %v808_v4  ;;  %vm816_vm12 = vcmp.gt.f32.partialorder %v808_v4, 0.0  ;;  %v2330_v37 = vsel %vm753_vm6, %v1095_v16, -1e+30  ;;  %v2354_v2 = vcvt.s32.f32 %v742_v44 }
 0x250   : > { %v774_v47 = vpop.permute.xlu1 %773  ;;  %v1090_v35 = vmul.f32 0.2, %v1074_v13  ;;  %vm1082_vm0 = vcmp.gt.f32.partialorder %v1074_v13, 0.0  ;;  %v1111_v46 = vsel %vm845_vm5, %v2330_v37, -inf }
 0x251   : > { %v2273_v49 = vpop.permute.xlu0 %1056  ;;  %v807_v8 = vadd.f32 %v2285_v58, %v774_v47  ;;  %v832_v38 = vsel %vm816_vm12, %v808_v4, %v824_v17  ;;  %v743_v4 = vunpack.c.2.s8 %v2317_v31 }
 0x252   : > { %v2341_v47 = vsel %vm756_vm13, %v832_v38, -1e+30  ;;  %v1076_v50 = vadd.f32 %v2277_v53, %v2273_v49  ;;  %v1098_v57 = vsel %vm1082_vm0, %v1074_v13, %v1090_v35 }
 0x253   : > { %v823_v21 = vmul.f32 0.2, %v807_v8  ;;  %vm815_vm14 = vcmp.gt.f32.partialorder %v807_v8, 0.0  ;;  %v855_v1 = vsel %vm845_vm5, %v2341_v47, -inf }
 0x254   : > { %v789_v51 = vpop.permute.xlu1 %788 }
 0x255   : > { %v2279_v54 = vpop.permute.xlu0 %1064  ;;  %v810_v36 = vadd.f32 %v2285_v58, %v789_v51  ;;  %v831_v41 = vsel %vm815_vm14, %v807_v8, %v823_v21 }
 0x256   : > { %v2349_v55 = vsel %vm755_vm15, %v831_v41, -1e+30 }
 0x257   : > { %v826_v51 = vmul.f32 0.2, %v810_v36  ;;  %vm818_vm3 = vcmp.gt.f32.partialorder %v810_v36, 0.0  ;;  %v852_v49 = vsel %vm845_vm5, %v2349_v55, -inf }
 0x258   : > { %v2281_v56 = vpop.permute.xlu1 %798 }
 0x259   : > { %v834_v8 = vsel %vm818_vm3, %v810_v36, %v826_v51 }
 0x25a   : > { %v764_v61 = vpop.permute.xlu0 %763 }
 0x25b   : > { %v805_v62 = vadd.f32 %v2285_v58, %v764_v61 }
 0x25d   : > { %v1041_v3 = vpop.permute.xlu1 %1040  ;;  %v821_v5 = vmul.f32 0.2, %v805_v62  ;;  %vm813_vm8 = vcmp.gt.f32.partialorder %v805_v62, 0.0 }
 0x25e   : > { %v1072_v6 = vadd.f32 %v2277_v53, %v1041_v3  ;;  %v769_v7 = vpop.permute.xlu0 %768  ;;  %v2360_v3 = vsel %vm756_vm13, %v1098_v57, -1e+30 }
 0x25f   : > { %v806_v9 = vadd.f32 %v2285_v58, %v769_v7  ;;  %v829_v20 = vsel %vm813_vm8, %v805_v62, %v821_v5  ;;  %v1092_v5 = vmul.f32 0.2, %v1076_v50  ;;  %vm1084_vm8 = vcmp.gt.f32.partialorder %v1076_v50, 0.0 }
 0x260   : > { %v1088_v11 = vmul.f32 0.2, %v1072_v6  ;;  %vm1080_vm10 = vcmp.gt.f32.partialorder %v1072_v6, 0.0  ;;  %v2323_v33 = vsel %vm753_vm6, %v829_v20, -1e+30 }
 0x261   : > { %v822_v14 = vmul.f32 0.2, %v806_v9  ;;  %v1045_v15 = vpop.permute.xlu1 %1044  ;;  %vm814_vm11 = vcmp.gt.f32.partialorder %v806_v9, 0.0  ;;  %v846_v43 = vsel %vm845_vm5, %v2323_v33, -inf  ;;  %v1100_v20 = vsel %vm1084_vm8, %v1076_v50, %v1092_v5 }
 0x262   : > { %v1096_v18 = vsel %vm1080_vm10, %v1072_v6, %v1088_v11  ;;  %v1073_v23 = vadd.f32 %v2277_v53, %v1045_v15  ;;  %v784_v27 = vpop.permute.xlu0 %783  ;;  %v812_v6 = vadd.f32 %v2285_v58, %v2281_v56  ;;  %vm758_vm10 = vcmp.gt.f32.partialorder %v2354_v2, 0.0 }
 0x263   : > { %v2307_v24 = vsel %vm754_vm9, %v1096_v18, -1e+30  ;;  %v830_v25 = vsel %vm814_vm11, %v806_v9, %v822_v14  ;;  %v809_v40 = vadd.f32 %v2285_v58, %v784_v27  ;;  %v1120_v14 = vsel %vm845_vm5, %v2360_v3, -inf }
 0x264   : > { %v1114_v29 = vsel %vm845_vm5, %v2307_v24, -inf  ;;  %v2313_v30 = vsel %vm754_vm9, %v830_v25, -1e+30  ;;  %v1089_v39 = vmul.f32 0.2, %v1073_v23  ;;  %vm1081_vm1 = vcmp.gt.f32.partialorder %v1073_v23, 0.0 }
 0x265   : > { %1115 = vmax.xlane.f32.xlu1 %v1114_v29  ;;  %v849_v32 = vsel %vm845_vm5, %v2313_v30, -inf  ;;  %v1053_v42 = vpop.permute.xlu1 %1052  ;;  %v825_v59 = vmul.f32 0.2, %v809_v40  ;;  %vm817_vm4 = vcmp.gt.f32.partialorder %v809_v40, 0.0  ;;  %v744_v15 = vunpack.c.3.s8 %v2317_v31 }
 0x266   : > { %850 = vmax.xlane.f32.xlu0 %v849_v32  ;;  %v1075_v61 = vadd.f32 %v2277_v53, %v1053_v42  ;;  %v1097_v62 = vsel %vm1081_vm1, %v1073_v23, %v1089_v39  ;;  %v794_v63 = vpop.permute.xlu0 %793  ;;  %v2379_v16 = vsel %vm758_vm10, %v834_v8, -1e+30  ;;  %v828_v17 = vmul.f32 0.2, %v812_v6 }
 0x267   : > { %v2368_v7 = vsel %vm755_vm15, %v1097_v62, -1e+30  ;;  %v811_v11 = vadd.f32 %v2285_v58, %v794_v63  ;;  %v833_v13 = vsel %vm817_vm4, %v809_v40, %v825_v59  ;;  %v1078_v58 = vadd.f32 %v2277_v53, %v2279_v54 }
 0x268   : > { %v1091_v9 = vmul.f32 0.2, %v1075_v61  ;;  %vm1083_vm11 = vcmp.gt.f32.partialorder %v1075_v61, 0.0  ;;  %v1117_v56 = vsel %vm845_vm5, %v2368_v7, -inf  ;;  %v2385_v18 = vsel %vm757_vm7, %v833_v13, -1e+30 }
 0x269   : > { %847 = vmax.xlane.f32.xlu1 %v846_v43  ;;  %v827_v21 = vmul.f32 0.2, %v811_v11  ;;  %vm820_vm12 = vcmp.gt.f32.partialorder %v812_v6, 0.0  ;;  %v2387_v25 = vcvt.s32.f32 %v743_v4  ;;  %v861_v27 = vsel %vm845_vm5, %v2379_v16, -inf  ;;  %v1061_v51 = vpop.permute.xlu1 %1060 }
 0x26a   : > { %1112 = vmax.xlane.f32.xlu0 %v1111_v46  ;;  %v1099_v23 = vsel %vm1083_vm11, %v1075_v61, %v1091_v9  ;;  %v2391_v29 = vcvt.s32.f32 %v744_v15  ;;  %vm819_vm14 = vcmp.gt.f32.partialorder %v811_v11, 0.0  ;;  %v858_v54 = vsel %vm845_vm5, %v2385_v18, -inf }
 0x26b   : > { %v2397_v31 = vsel %vm758_vm10, %v1100_v20, -1e+30  ;;  %v1094_v32 = vmul.f32 0.2, %v1078_v58  ;;  %v2401_v34 = vsel %vm757_vm7, %v1099_v23, -1e+30  ;;  %v836_v35 = vsel %vm820_vm12, %v812_v6, %v828_v17 }
 0x26c   : > { %vm759_vm0 = vcmp.gt.f32.partialorder %v2387_v25, 0.0  ;;  %v835_v36 = vsel %vm819_vm14, %v811_v11, %v827_v21  ;;  %vm1086_vm1 = vcmp.gt.f32.partialorder %v1078_v58, 0.0  ;;  %v1126_v38 = vsel %vm845_vm5, %v2397_v31, -inf }
 0x26d   : > { %856 = vmax.xlane.f32.xlu1 %v855_v1  ;;  %vm760_vm3 = vcmp.gt.f32.partialorder %v2391_v29, 0.0  ;;  %v1123_v39 = vsel %vm845_vm5, %v2401_v34, -inf  ;;  %v2415_v41 = vsel %vm759_vm0, %v835_v36, -1e+30  ;;  %v1102_v42 = vsel %vm1086_vm1, %v1078_v58, %v1094_v32 }
 0x26e   : > { %853 = vmax.xlane.f32.xlu0 %v852_v49  ;;  %v2411_v40 = vsel %vm760_vm3, %v836_v35, -1e+30  ;;  %v864_v44 = vsel %vm845_vm5, %v2415_v41, -inf  ;;  %v2423_v46 = vsel %vm760_vm3, %v1102_v42, -1e+30  ;;  %v1077_v57 = vadd.f32 %v2277_v53, %v1061_v51 }
 0x26f   : > { %v867_v43 = vsel %vm845_vm5, %v2411_v40, -inf  ;;  %v1132_v50 = vsel %vm845_vm5, %v2423_v46, -inf }
 0x270   : > { %v1093_v59 = vmul.f32 0.2, %v1077_v57  ;;  %vm1085_vm4 = vcmp.gt.f32.partialorder %v1077_v57, 0.0 }
 0x271   : > { %1121 = vmax.xlane.f32.xlu1 %v1120_v14 }
 0x272   : > { %1118 = vmax.xlane.f32.xlu0 %v1117_v56  ;;  %v1101_v61 = vsel %vm1085_vm4, %v1077_v57, %v1093_v59 }
 0x273   : > { %v2433_v62 = vsel %vm759_vm0, %v1101_v61, -1e+30 }
 0x274   : > { %v1129_v63 = vsel %vm845_vm5, %v2433_v62, -inf }
 0x275   : > { %862 = vmax.xlane.f32.xlu1 %v861_v27 }
 0x276   : > { %859 = vmax.xlane.f32.xlu0 %v858_v54 }
 0x279   : > { %1127 = vmax.xlane.f32.xlu1 %v1126_v38 }
 0x27a   : > { %1124 = vmax.xlane.f32.xlu0 %v1123_v39 }
 0x27d   : > { %868 = vmax.xlane.f32.xlu1 %v867_v43 }
 0x27e   : > { %865 = vmax.xlane.f32.xlu0 %v864_v44 }
 0x281   : > { %1133 = vmax.xlane.f32.xlu1 %v1132_v50 }
 0x292   : > { %1201 = vrot.lane.b32.xlu1 %v2227_v19, %s2113_s19 }
 0x294   : > { %1199 = vrot.lane.b32.xlu0 %v2235_v22, %s2113_s19 }
 0x296   : > { %1203 = vrot.lane.b32.xlu1 %v2250_v28, %s2113_s19 }
 0x2b3   : > { %1130 = vmax.xlane.f32.xlu0 %v1129_v63 }
 0x2c9   : > { %1205 = vrot.lane.b32.xlu0 %v2247_v26, %s2113_s19 }
 0x2f2   : > { %v1116_v19 = vpop.xlane.xlu1 %1115 }
 0x2f3   : > { %v1136_v22 = vsub.f32 %v2307_v24, %v1116_v19  ;;  %v851_v28 = vpop.xlane.xlu0 %850 }
 0x2f4   : > { %v871_v1 = vsub.f32 %v2313_v30, %v851_v28 }
 0x2f5   : > { %v1145_v53 = vmul.f32 1.442695, %v1136_v22 }
 0x2f6   : > { %v880_v49 = vmul.f32 1.442695, %v871_v1  ;;  %v848_v4 = vpop.xlane.xlu1 %847 }
 0x2f7   : > { %2011 = vpow2.f32 %v1145_v53  ;;  %v870_v5 = vsub.f32 %v2323_v33, %v848_v4  ;;  %v1113_v6 = vpop.xlane.xlu0 %1112 }
 0x2f8   : > { %v1135_v8 = vsub.f32 %v2330_v37, %v1113_v6  ;;  %2013 = vpow2.f32 %v880_v49 }
 0x2f9   : > { %v878_v9 = vmul.f32 1.442695, %v870_v5 }
 0x2fa   : > { %v1143_v11 = vmul.f32 1.442695, %v1135_v8  ;;  %v857_v13 = vpop.xlane.xlu1 %856 }
 0x2fb   : > { %2015 = vpow2.f32 %v878_v9  ;;  %v873_v26 = vsub.f32 %v2341_v47, %v857_v13  ;;  %v854_v24 = vpop.xlane.xlu0 %853 }
 0x2fc   : > { %2017 = vpow2.f32 %v1143_v11  ;;  %v872_v30 = vsub.f32 %v2349_v55, %v854_v24 }
 0x2fd   : > { %v884_v14 = vmul.f32 1.442695, %v873_v26 }
 0x2fe   : > { %v882_v15 = vmul.f32 1.442695, %v872_v30  ;;  %v1122_v56 = vpop.xlane.xlu1 %1121 }
 0x2ff   : > { %2019 = vpow2.f32 %v884_v14  ;;  %v1138_v33 = vsub.f32 %v2360_v3, %v1122_v56  ;;  %v1119_v58 = vpop.xlane.xlu0 %1118 }
 0x300   : > { %2021 = vpow2.f32 %v882_v15  ;;  %v1137_v37 = vsub.f32 %v2368_v7, %v1119_v58 }
 0x301   : > { %v2012_v17 = vpop.eup %2011  ;;  %v1149_v20 = vmul.f32 1.442695, %v1138_v33 }
 0x302   : > { %v1147_v21 = vmul.f32 1.442695, %v1137_v37  ;;  %v863_v23 = vpop.xlane.xlu1 %862  ;;  %v2448_v47 = vsel %vm754_vm9, %v2012_v17, 0.0  ;;  %v2014_v27 = vpop.eup %2013 }
 0x303   : > { %2023 = vpow2.f32 %v1149_v20  ;;  %v875_v55 = vsub.f32 %v2379_v16, %v863_v23  ;;  %v860_v54 = vpop.xlane.xlu0 %859  ;;  %v1170_v3 = vsel %vm845_vm5, %v2448_v47, 0.0  ;;  %v2460_v16 = vsel %vm754_vm9, %v2014_v27, 0.0 }
 0x304   : > { %2025 = vpow2.f32 %v1147_v21  ;;  %v874_v32 = vsub.f32 %v2385_v18, %v860_v54  ;;  %1171 = vadd.xlane.f32.xlu0 %v1170_v3  ;;  %vm1539_vm9 = vcmask 516096  }
 0x305   : > { %v2016_v7 = vpop.eup %2015  ;;  %v888_v35 = vmul.f32 1.442695, %v875_v55 }
 0x306   : > { %v2018_v36 = vpop.eup %2017  ;;  %v886_v38 = vmul.f32 1.442695, %v874_v32  ;;  %v1128_v39 = vpop.xlane.xlu1 %1127  ;;  %v2456_v42 = vsel %vm753_vm6, %v2016_v7, 0.0  ;;  %v905_v7 = vsel %vm845_vm5, %v2460_v16, 0.0 }
 0x307   : > { %2027 = vpow2.f32 %v888_v35  ;;  %v1140_v43 = vsub.f32 %v2397_v31, %v1128_v39  ;;  %v1125_v44 = vpop.xlane.xlu0 %1124  ;;  %v2465_v18 = vsel %vm753_vm6, %v2018_v36, 0.0  ;;  %v926_v50 = vpack.c.bf16 %v2460_v16, %v2456_v42 }
 0x308   : > { %2029 = vpow2.f32 %v886_v38  ;;  %v1139_v51 = vsub.f32 %v2401_v34, %v1125_v44  ;;  %v1167_v57 = vsel %vm845_vm5, %v2465_v18, 0.0  ;;  %v1191_v3 = vpack.c.bf16 %v2448_v47, %v2465_v18 }
 0x309   : > { %v2020_v0 = vpop.eup %2019  ;;  %v1153_v59 = vmul.f32 1.442695, %v1140_v43  ;;  %1168 = vadd.xlane.f32.xlu1 %v1167_v57  ;;  %1901 = vmatprep.mubr.msk.bf16.mxu1 %vm845_vm5, %v926_v50  ;;  %vm1344_vm6 = vcmask 130048  }
 0x30a   : > { %v2022_v31 = vpop.eup %2021  ;;  %v2475_v60 = vsel %vm756_vm13, %v2020_v0, 0.0  ;;  %v1151_v61 = vmul.f32 1.442695, %v1139_v51  ;;  %v869_v63 = vpop.xlane.xlu1 %868 }
 0x30b   : > { %v2479_v19 = vsel %vm755_vm15, %v2022_v31, 0.0  ;;  %2031 = vpow2.f32 %v1153_v59  ;;  %v877_v34 = vsub.f32 %v2411_v40, %v869_v63  ;;  %v866_v22 = vpop.xlane.xlu0 %865  ;;  %v911_v35 = vsel %vm845_vm5, %v2475_v60, 0.0  ;;  %v1368_v31 = vld [vmem:[%s2695_s6] sm:$0xff] }
 0x30c   : > { %v927_v28 = vpack.c.bf16 %v2475_v60, %v2479_v19  ;;  %2033 = vpow2.f32 %v1151_v61  ;;  %v876_v1 = vsub.f32 %v2415_v41, %v866_v22  ;;  %v908_v0 = vsel %vm845_vm5, %v2479_v19, 0.0  ;;  %v1369_v60 = vld [vmem:[%s2695_s6 + $0x8] sm:$0xff] }
 0x30d   : > { %v2024_v53 = vpop.eup %2023  ;;  %v892_v49 = vmul.f32 1.442695, %v877_v34 }
 0x30e   : > { %v2026_v4 = vpop.eup %2025  ;;  %v890_v5 = vmul.f32 1.442695, %v876_v1  ;;  %1902 = vmatmul.mubr.msk.bf16.vlgmr.msra.gmra.mrb[8].mxu1 %vm845_vm5, %v927_v28  ;;  %v1134_v6 = vpop.xlane.xlu1 %1133  ;;  %v2488_v8 = vsel %vm756_vm13, %v2024_v53, 0.0  ;;  %vm1555_vm13 = vcmask 0  }
 0x30f   : > { %2035 = vpow2.f32 %v892_v49  ;;  %v1142_v40 = vsub.f32 %v2423_v46, %v1134_v6  ;;  %v1200_v9 = vpop.permute.xlu0 %1199  ;;  %v1176_v11 = vsel %vm845_vm5, %v2488_v8, 0.0  ;;  %v1161_v41 = vsel %vm755_vm15, %v2026_v4, 0.0 }
 0x310   : > { %2037 = vpow2.f32 %v890_v5  ;;  %1909 = vmatprep.subr.bf16.mxu1 %v1200_v9  ;;  %1177 = vadd.xlane.f32.xlu1 %v1176_v11  ;;  %v1173_v13 = vsel %vm845_vm5, %v1161_v41, 0.0  ;;  %v1192_v16 = vpack.c.bf16 %v2488_v8, %v1161_v41  ;;  %v1370_v11 = vld [vmem:[%s2695_s6 + $0x10] sm:$0xff]  ;;  %v1371_v41 = vld [vmem:[%s2695_s6 + $0x18] sm:$0xff] }
 0x311   : > { %v2028_v26 = vpop.eup %2027  ;;  %v1157_v24 = vmul.f32 1.442695, %v1142_v40  ;;  %1174 = vadd.xlane.f32.xlu0 %v1173_v13  ;;  %1910 = vmatpush3.bf16.msra.mxu1 %v1200_v9  ;;  %v1973_v13 = vpack.c.bf16 %v1371_v41, %v1370_v11 }
 0x312   : > { %v2030_v10 = vpop.eup %2029  ;;  %v1202_v30 = vpop.permute.xlu1 %1201  ;;  %v899_v46 = vsel %vm758_vm10, %v2028_v26, 0.0 }
 0x313   : > { %2039 = vpow2.f32 %v1157_v24  ;;  %1911 = vmatprep.subr.bf16.mxu1 %v1202_v30  ;;  %v898_v12 = vsel %vm757_vm7, %v2030_v10, 0.0  ;;  %v917_v47 = vsel %vm845_vm5, %v899_v46, 0.0 }
 0x314   : > { %v928_v14 = vpack.c.bf16 %v899_v46, %v898_v12  ;;  %v914_v59 = vsel %vm845_vm5, %v898_v12, 0.0 }
 0x315   : > { %v2032_v15 = vpop.eup %2031  ;;  %1912 = vmatpush3.bf16.msra.mxu1 %v1202_v30 }
 0x316   : > { %v2034_v56 = vpop.eup %2033  ;;  %1905 = vmatprep.mubr.msk.bf16.mxu1 %vm845_vm5, %v928_v14  ;;  %v1204_v33 = vpop.permute.xlu1 %1203  ;;  %v1164_v58 = vsel %vm758_vm10, %v2032_v15, 0.0 }
 0x317   : > { %1913 = vmatprep.subr.bf16.mxu1 %v1204_v33  ;;  %v1182_v37 = vsel %vm845_vm5, %v1164_v58, 0.0  ;;  %v1163_v17 = vsel %vm757_vm7, %v2034_v56, 0.0 }
 0x318   : > { %1183 = vadd.xlane.f32.xlu1 %v1182_v37  ;;  %v1179_v20 = vsel %vm845_vm5, %v1163_v17, 0.0  ;;  %v1193_v44 = vpack.c.bf16 %v1164_v58, %v1163_v17 }
 0x319   : > { %v2036_v21 = vpop.eup %2035  ;;  %1180 = vadd.xlane.f32.xlu0 %v1179_v20  ;;  %1914 = vmatpush3.bf16.msra.mxu1 %v1204_v33 }
 0x31a   : > { %v2038_v23 = vpop.eup %2037  ;;  %v901_v27 = vsel %vm760_vm3, %v2036_v21, 0.0 }
 0x31b   : > { %v900_v2 = vsel %vm759_vm0, %v2038_v23, 0.0  ;;  %v923_v36 = vsel %vm845_vm5, %v901_v27, 0.0 }
 0x31c   : > { %v929_v55 = vpack.c.bf16 %v901_v27, %v900_v2  ;;  %v920_v25 = vsel %vm845_vm5, %v900_v2, 0.0 }
 0x31d   : > { %v2040_v54 = vpop.eup %2039 }
 0x31e   : > { %1906 = vmatmul.mubr.msk.bf16.gmra.mrb[12].mxu1 %vm845_vm5, %v929_v55  ;;  %v1166_v48 = vsel %vm760_vm3, %v2040_v54, 0.0 }
 0x31f   : > { %1917 = vmatprep.mubr.msk.bf16.mxu1 %vm845_vm5, %v1191_v3  ;;  %v1188_v32 = vsel %vm845_vm5, %v1166_v48, 0.0 }
 0x320   : > { %1189 = vadd.xlane.f32.xlu1 %v1188_v32 }
 0x324   : > { %906 = vadd.xlane.f32.xlu1 %v905_v7 }
 0x328   : > { %912 = vadd.xlane.f32.xlu1 %v911_v35 }
 0x32c   : > { %918 = vadd.xlane.f32.xlu1 %v917_v47 }
 0x330   : > { %924 = vadd.xlane.f32.xlu1 %v923_v36 }
 0x340   : > { %v1131_v29 = vpop.xlane.xlu0 %1130 }
 0x341   : > { %v1141_v38 = vsub.f32 %v2433_v62, %v1131_v29  ;;  %v902_v62 = vsel %vm845_vm5, %v2456_v42, 0.0  ;;  %v1969_v42 = vpack.c.bf16 %v1369_v60, %v1368_v31 }
 0x343   : > { %v1155_v39 = vmul.f32 1.442695, %v1141_v38  ;;  %1970 = vmatprep.subr.bf16.mxu0 %v1969_v42 }
 0x344   : > { %v1206_v43 = vpop.permute.xlu0 %1205  ;;  %1972 = vmatpush3.bf16.msra.mxu0 %v1969_v42 }
 0x345   : > { %2041 = vpow2.f32 %v1155_v39  ;;  %1915 = vmatprep.subr.bf16.mxu1 %v1206_v43  ;;  %1974 = vmatprep.subr.bf16.mxu0 %v1973_v13 }
 0x346   : > { %1916 = vmatpush3.bf16.msra.mxu1 %v1206_v43 }
 0x347   : > { %1977 = vmatprep.subr.bf16.mxu1 %v1969_v42 }
 0x348   : > { %1976 = vmatpush3.bf16.msra.mxu0 %v1973_v13 }
 0x349   : > { %1918 = vmatmul.mubr.msk.bf16.vlgmr.msra.gmra.mrb[16].mxu1 %vm845_vm5, %v1192_v16 }
 0x34a   : > { %1921 = vmatprep.mubr.msk.bf16.mxu1 %vm845_vm5, %v1193_v44  ;;  %1979 = vmatpush3.bf16.msra.mxu1 %v1969_v42 }
 0x34b   : > { %1978 = vmatprep.subr.bf16.mxu1 %v1973_v13 }
 0x34e   : > { %1980 = vmatpush3.bf16.msra.mxu1 %v1973_v13 }
 0x34f   : > { %v2042_v18 = vpop.eup %2041 }
 0x350   : > { %v1165_v50 = vsel %vm759_vm0, %v2042_v18, 0.0 }
 0x351   : > { %v1185_v51 = vsel %vm845_vm5, %v1165_v50, 0.0  ;;  %v1194_v57 = vpack.c.bf16 %v1166_v48, %v1165_v50 }
 0x352   : > { %1186 = vadd.xlane.f32.xlu0 %v1185_v51 }
 0x353   : > { %1922 = vmatmul.mubr.msk.bf16.gmra.mrb[20].mxu1 %vm845_vm5, %v1194_v57 }
 0x356   : > { %903 = vadd.xlane.f32.xlu0 %v902_v62 }
 0x35a   : > { %909 = vadd.xlane.f32.xlu0 %v908_v0 }
 0x35e   : > { %915 = vadd.xlane.f32.xlu0 %v914_v59 }
 0x362   : > { %921 = vadd.xlane.f32.xlu0 %v920_v25 }
 0x391   : > { %v1172_v4 = vpop.xlane.xlu0 %1171 }
 0x392   : > { %v1289_v8 = vmax.f32 %v1172_v4, 1e-30 }
 0x396   : > { %v1169_v49 = vpop.xlane.xlu1 %1168 }
 0x397   : > { %v1288_v5 = vmax.f32 %v1169_v49, 1e-30 }
 0x399   : > { %2043 = vrcp.f32 %v1288_v5 }
 0x39a   : > { %2045 = vrcp.f32 %v1289_v8 }
 0x39d   : > { %v1178_v6 = vpop.xlane.xlu1 %1177 }
 0x39e   : > { %v1175_v40 = vpop.xlane.xlu0 %1174  ;;  %v1291_v9 = vmax.f32 %v1178_v6, 1e-30 }
 0x39f   : > { %v1290_v26 = vmax.f32 %v1175_v40, 1e-30 }
 0x3a0   : > { %2047 = vrcp.f32 %v1291_v9  ;;  %v1770_v9 = vld [vmem:[%s383_s23] ss:$0 sm:$0xff] }
 0x3a1   : > { %2049 = vrcp.f32 %v1290_v26 }
 0x3a3   : > { %v2044_v56 = vpop.eup %2043 }
 0x3a4   : > { %v2046_v20 = vpop.eup %2045 }
 0x3a5   : > { %v1184_v10 = vpop.xlane.xlu1 %1183 }
 0x3a6   : > { %v1181_v24 = vpop.xlane.xlu0 %1180  ;;  %v1293_v12 = vmax.f32 %v1184_v10, 1e-30 }
 0x3a7   : > { %v1292_v30 = vmax.f32 %v1181_v24, 1e-30 }
 0x3a9   : > { %2051 = vrcp.f32 %v1292_v30 }
 0x3aa   : > { %2053 = vrcp.f32 %v1293_v12  ;;  %v2048_v2 = vpop.eup %2047 }
 0x3ab   : > { %v2050_v54 = vpop.eup %2049 }
 0x3ad   : > { %v1190_v14 = vpop.xlane.xlu1 %1189 }
 0x3ae   : > { %v1295_v21 = vmax.f32 %v1190_v14, 1e-30 }
 0x3b1   : > { %v907_v50 = vpop.xlane.xlu1 %906 }
 0x3b2   : > { %v1012_v0 = vmax.f32 %v907_v50, 1e-30 }
 0x3b3   : > { %v2052_v32 = vpop.eup %2051 }
 0x3b4   : > { %v2054_v36 = vpop.eup %2053 }
 0x3b5   : > { %v913_v62 = vpop.xlane.xlu1 %912 }
 0x3b6   : > { %v1014_v31 = vmax.f32 %v913_v62, 1e-30 }
 0x3b9   : > { %v919_v60 = vpop.xlane.xlu1 %918 }
 0x3ba   : > { %v1016_v4 = vmax.f32 %v919_v60, 1e-30 }
 0x3bd   : > { %v925_v8 = vpop.xlane.xlu1 %924 }
 0x3be   : > { %v1018_v41 = vmax.f32 %v925_v8, 1e-30 }
 0x3df   : > { %v1187_v46 = vpop.xlane.xlu0 %1186 }
 0x3e0   : > { %v1294_v33 = vmax.f32 %v1187_v46, 1e-30 }
 0x3e1   : > { %v2544_v61 = vpop.f32.mrb[8].mxu1 }
 0x3e2   : > { %v2546_v63 = vpop.f32.mrb[9].mxu1  ;;  %2055 = vrcp.f32 %v1294_v33 }
 0x3e3   : > { %v2548_v19 = vpop.f32.mrb[10].mxu1  ;;  %2057 = vrcp.f32 %v1295_v21  ;;  %v904_v18 = vpop.xlane.xlu0 %903 }
 0x3e4   : > { %v2550_v34 = vpop.f32.mrb[11].mxu1  ;;  %v1011_v57 = vmax.f32 %v904_v18, 1e-30 }
 0x3e6   : > { %2059 = vrcp.f32 %v1011_v57 }
 0x3e7   : > { %v910_v51 = vpop.xlane.xlu0 %909  ;;  %2061 = vrcp.f32 %v1012_v0 }
 0x3e8   : > { %v1013_v25 = vmax.f32 %v910_v51, 1e-30 }
 0x3ea   : > { %2063 = vrcp.f32 %v1013_v25 }
 0x3eb   : > { %v916_v59 = vpop.xlane.xlu0 %915  ;;  %2065 = vrcp.f32 %v1014_v31 }
 0x3ec   : > { %v2056_v39 = vpop.eup %2055  ;;  %v1015_v42 = vmax.f32 %v916_v59, 1e-30 }
 0x3ed   : > { %v2058_v16 = vpop.eup %2057 }
 0x3ee   : > { %2067 = vrcp.f32 %v1015_v42 }
 0x3ef   : > { %v922_v49 = vpop.xlane.xlu0 %921  ;;  %2069 = vrcp.f32 %v1016_v4 }
 0x3f0   : > { %v2060_v5 = vpop.eup %2059  ;;  %v1017_v6 = vmax.f32 %v922_v49, 1e-30 }
 0x3f1   : > { %v2552_v22 = vpop.f32.mrb[12].mxu1  ;;  %v1027_v40 = vmul.f32 %v2060_v5, %v2546_v63  ;;  %v2062_v11 = vpop.eup %2061 }
 0x3f2   : > { %v2554_v28 = vpop.f32.mrb[13].mxu1  ;;  %2071 = vrcp.f32 %v1017_v6  ;;  %v1028_v26 = vmul.f32 %v2062_v11, %v2550_v34 }
 0x3f3   : > { %v2556_v1 = vpop.f32.mrb[14].mxu1  ;;  %2073 = vrcp.f32 %v1018_v41 }
 0x3f4   : > { %v2558_v53 = vpop.f32.mrb[15].mxu1  ;;  %v2064_v10 = vpop.eup %2063 }
 0x3f5   : > { %v2066_v12 = vpop.eup %2065  ;;  %v1029_v34 = vmul.f32 %v2064_v10, %v2544_v61 }
 0x3f6   : > { %v1030_v14 = vmul.f32 %v2066_v12, %v2548_v19 }
 0x3f8   : > { %v2068_v33 = vpop.eup %2067 }
 0x3f9   : > { %v2070_v19 = vpop.eup %2069  ;;  %v1031_v21 = vmul.f32 %v2068_v33, %v2554_v28 }
 0x41c   : > { %v1919_v15 = vpop.f32.mrb[16].mxu1 }
 0x41d   : > { %v1257_v58 = vpop.f32.mrb[17].mxu1  ;;  %v1306_v3 = vmul.f32 %v2050_v54, %v1919_v15 }
 0x41e   : > { %v1304_v37 = vmul.f32 %v2044_v56, %v1257_v58  ;;  %v1920_v17 = vpop.f32.mrb[18].mxu1 }
 0x41f   : > { %v1260_v23 = vpop.f32.mrb[19].mxu1  ;;  %v1307_v55 = vmul.f32 %v2048_v2, %v1920_v17  ;;  %v1032_v2 = vmul.f32 %v2070_v19, %v2558_v53 }
 0x420   : > { %v1305_v27 = vmul.f32 %v2046_v20, %v1260_v23  ;;  %1320 = vrot.lane.b32.xlu0 %v1304_v37, %s2114_s12 }
 0x422   : > { %1322 = vrot.lane.b32.xlu1 %v1305_v27, %s2114_s12  ;;  %v2072_v27 = vpop.eup %2071 }
 0x424   : > { %1326 = vrot.lane.b32.xlu0 %v1307_v55, %s2114_s12 }
 0x426   : > { %1324 = vrot.lane.b32.xlu1 %v1306_v3, %s2114_s12  ;;  %v1923_v48 = vpop.f32.mrb[20].mxu1 }
 0x427   : > { %v1273_v7 = vpop.f32.mrb[21].mxu1  ;;  %v1310_v43 = vmul.f32 %v2056_v39, %v1923_v48  ;;  %v1033_v48 = vmul.f32 %v2072_v27, %v2552_v22 }
 0x428   : > { %v1308_v35 = vmul.f32 %v2052_v32, %v1273_v7  ;;  %v1924_v47 = vpop.f32.mrb[22].mxu1  ;;  %v2074_v32 = vpop.eup %2073 }
 0x429   : > { %v1276_v29 = vpop.f32.mrb[23].mxu1  ;;  %v1311_v44 = vmul.f32 %v2058_v16, %v1924_v47  ;;  %v1034_v53 = vmul.f32 %v2074_v32, %v2556_v1  ;;  %v1771_v1 = vld [vmem:[%s2696_s7] ss:$0 sm:$0xff] }
 0x42a   : > { %v1309_v38 = vmul.f32 %v2054_v36, %v1276_v29  ;;  %1328 = vrot.lane.b32.xlu1 %v1308_v35, %s2114_s12 }
 0x42c   : > { %1330 = vrot.lane.b32.xlu0 %v1309_v38, %s2114_s12 }
 0x42e   : > { %1332 = vrot.lane.b32.xlu1 %v1310_v43, %s2114_s12 }
 0x430   : > { %1334 = vrot.lane.b32.xlu0 %v1311_v44, %s2114_s12 }
 0x492   : > { %v1321_v13 = vpop.permute.xlu0 %1320 }
 0x493   : > { %v1345_v24 = vsel %vm1344_vm6, %v1027_v40, %v1321_v13 }
 0x494   : > { %v2574_v30 = vadd.f32 %v1770_v9, %v1345_v24  ;;  %v1323_v46 = vpop.permute.xlu1 %1322 }
 0x495   : > { %v1346_v63 = vsel %vm1344_vm6, %v1028_v26, %v1323_v46 }
 0x496   : > { %v2578_v15 = vadd.f32 %v1770_v9, %v1346_v63  ;;  %1933 = vmatprep.mubr.msk.f32.mxu0 %vm450_vm2, %v2574_v30  ;;  %v1327_v56 = vpop.permute.xlu0 %1326 }
 0x497   : > { %v1348_v58 = vsel %vm1344_vm6, %v1030_v14, %v1327_v56 }
 0x498   : > { %1934 = vmatmul.mubr.msk.f32.vlgmr.msra.gmra.mrb[10].mxu0 %vm450_vm2, %v2578_v15  ;;  %v1325_v37 = vpop.permute.xlu1 %1324  ;;  %v2590_v23 = vadd.f32 %v1770_v9, %v1348_v58 }
 0x499   : > { %v1347_v17 = vsel %vm1344_vm6, %v1029_v34, %v1325_v37 }
 0x49a   : > { %v2587_v20 = vadd.f32 %v1770_v9, %v1347_v17 }
 0x49c   : > { %1936 = vmatprep.mubr.msk.f32.mxu0 %vm450_vm2, %v2587_v20  ;;  %v1329_v61 = vpop.permute.xlu1 %1328 }
 0x49d   : > { %v1349_v55 = vsel %vm1344_vm6, %v1031_v21, %v1329_v61  ;;  %1937 = vmatmul.mubr.msk.f32.gmra.mrb[12].mxu0 %vm450_vm2, %v2590_v23 }
 0x49e   : > { %v2598_v54 = vadd.f32 %v1770_v9, %v1349_v55  ;;  %v1331_v3 = vpop.permute.xlu0 %1330 }
 0x49f   : > { %v1350_v28 = vsel %vm1344_vm6, %v1032_v2, %v1331_v3  ;;  %v1537_v3 = vld [vmem:[%s2697_s8] sm:$0x1] }
 0x4a0   : > { %v2602_v7 = vadd.f32 %v1770_v9, %v1350_v28  ;;  %1939 = vmatprep.mubr.msk.f32.mxu0 %vm450_vm2, %v2598_v54  ;;  %v1333_v35 = vpop.permute.xlu1 %1332 }
 0x4a1   : > { %v1351_v47 = vsel %vm1344_vm6, %v1033_v48, %v1333_v35  ;;  %v1544_v35 = vld [vmem:[#allocation2] sm:$0x1] }
 0x4a2   : > { %v2608_v36 = vadd.f32 %v1770_v9, %v1351_v47  ;;  %v1335_v29 = vpop.permute.xlu0 %1334  ;;  %1940 = vmatmul.mubr.msk.f32.gmra.mrb[14].mxu0 %vm450_vm2, %v2602_v7 }
 0x4a3   : > { %v1352_v22 = vsel %vm1344_vm6, %v1034_v53, %v1335_v29 }
 0x4a4   : > { %v2613_v38 = vadd.f32 %v1770_v9, %v1352_v22  ;;  %1942 = vmatprep.mubr.msk.f32.mxu1 %vm450_vm2, %v2608_v36 }
 0x4a6   : > { %1943 = vmatmul.mubr.msk.f32.vlgmr.msra.gmra.mrb[24].mxu1 %vm450_vm2, %v2613_v38 }
 0x56b   : > { %v1935_v39 = vpop.f32.mrb[10].mxu0 }
 0x56c   : > { %v1475_v43 = vadd.f32 %v1935_v39, %v1771_v1  ;;  %v1469_v16 = vpop.f32.mrb[11].mxu0 }
 0x56d   : > { %v1470_v44 = vadd.f32 %v1771_v1, %v1469_v16  ;;  %v1552_v16 = vld [vmem:[#allocation3] sm:$0x1] }
 0x56e   : > { %2075 = vtanh.f32 %v1475_v43 }
 0x56f   : > { %2077 = vtanh.f32 %v1470_v44 }
 0x570   : > { %v1938_v18 = vpop.f32.mrb[12].mxu0 }
 0x571   : > { %v1485_v50 = vadd.f32 %v1938_v18, %v1771_v1  ;;  %v1479_v51 = vpop.f32.mrb[13].mxu0 }
 0x572   : > { %v1480_v57 = vadd.f32 %v1771_v1, %v1479_v51 }
 0x573   : > { %2079 = vtanh.f32 %v1485_v50 }
 0x574   : > { %2081 = vtanh.f32 %v1480_v57 }
 0x575   : > { %v1941_v62 = vpop.f32.mrb[14].mxu0 }
 0x576   : > { %v1495_v0 = vadd.f32 %v1941_v62, %v1771_v1  ;;  %v1489_v59 = vpop.f32.mrb[15].mxu0 }
 0x577   : > { %v1490_v25 = vadd.f32 %v1771_v1, %v1489_v59  ;;  %v1558_v59 = vld [vmem:[#allocation4 + $0x8] sm:$0xff] }
 0x578   : > { %v2076_v31 = vpop.eup %2075  ;;  %2083 = vtanh.f32 %v1495_v0  ;;  %v1557_v0 = vld [vmem:[#allocation4] sm:$0xff] }
 0x579   : > { %v2078_v60 = vpop.eup %2077  ;;  %v1517_v42 = vsel %vm845_vm5, %v2076_v31, 0.0  ;;  %2085 = vtanh.f32 %v1490_v25  ;;  %v1944_v49 = vpop.f32.mrb[24].mxu1  ;;  %v1559_v25 = vld [vmem:[#allocation4 + $0x10] sm:$0xff]  ;;  %v1560_v31 = vld [vmem:[#allocation4 + $0x18] sm:$0xff] }
 0x57a   : > { %v1516_v4 = vsel %vm845_vm5, %v2078_v60, 0.0  ;;  %v1505_v5 = vadd.f32 %v1944_v49, %v1771_v1  ;;  %v1499_v6 = vpop.f32.mrb[25].mxu1  ;;  %v1561_v60 = vld [vmem:[#allocation4 + $0x20] sm:$0xff] }
 0x57b   : > { %v1518_v8 = vadd.f32 %v1517_v42, %v1516_v4  ;;  %v1500_v40 = vadd.f32 %v1771_v1, %v1499_v6  ;;  %v1564_v6 = vld [vmem:[#allocation4 + $0x38] sm:$0xff] }
 0x57c   : > { %2087 = vtanh.f32 %v1505_v5  ;;  %v1563_v5 = vld [vmem:[#allocation4 + $0x30] sm:$0xff] }
 0x57d   : > { %v2080_v9 = vpop.eup %2079  ;;  %2089 = vtanh.f32 %v1500_v40 }
 0x57e   : > { %v2082_v11 = vpop.eup %2081  ;;  %v1521_v26 = vsel %vm845_vm5, %v2080_v9, 0.0 }
 0x57f   : > { %v1519_v41 = vsel %vm845_vm5, %v2082_v11, 0.0 }
 0x580   : > { %v1520_v13 = vadd.f32 %v1519_v41, %v1518_v8 }
 0x582   : > { %v2084_v24 = vpop.eup %2083  ;;  %v1522_v10 = vadd.f32 %v1521_v26, %v1520_v13 }
 0x583   : > { %v2086_v46 = vpop.eup %2085  ;;  %v1525_v56 = vsel %vm845_vm5, %v2084_v24, 0.0 }
 0x584   : > { %v1523_v12 = vsel %vm845_vm5, %v2086_v46, 0.0 }
 0x585   : > { %v1524_v63 = vadd.f32 %v1523_v12, %v1522_v10 }
 0x586   : > { %v2088_v14 = vpop.eup %2087 }
 0x587   : > { %v2090_v34 = vpop.eup %2089  ;;  %v1526_v33 = vadd.f32 %v1525_v56, %v1524_v63  ;;  %v1529_v17 = vsel %vm845_vm5, %v2088_v14, 0.0 }
 0x588   : > { %v1527_v58 = vsel %vm845_vm5, %v2090_v34, 0.0 }
 0x589   : > { %v1528_v37 = vadd.f32 %v1527_v58, %v1526_v33 }
 0x58b   : > { %v1530_v19 = vadd.f32 %v1529_v17, %v1528_v37 }
 0x58d   : > { %v1531_v21 = vrot.slane %v1530_v19, 4 }
 0x58f   : > { %v1532_v27 = vadd.f32 %v1531_v21, %v1530_v19 }
 0x591   : > { %v1533_v61 = vrot.slane %v1532_v27, 2 }
 0x593   : > { %v1534_v2 = vadd.f32 %v1533_v61, %v1532_v27 }
 0x595   : > { %v1535_v55 = vrot.slane %v1534_v2, 1 }
 0x597   : > { %v1536_v48 = vadd.f32 %v1535_v55, %v1534_v2 }
 0x599   : > { %v1538_v28 = vmul.f32 %v1537_v3, %v1536_v48 }
 0x59b   : > { %v1540_v32 = vsel %vm1539_vm9, %v1538_v28, 0.0 }
 0x59c   : > { %1541 = vadd.xlane.f32.xlu1 %v1540_v32 }
 0x629   : > { %v1542_v53 = vpop.xlane.xlu1 %1541 }
 0x62a   : > { %v1543_v47 = vmul.f32 0.015625, %v1542_v53 }
 0x62c   : > { %v1545_v29 = vmax.f32 %v1544_v35, %v1543_v47 }
 0x62e   : > { %v1546_v22 = vsub.f32 %v1544_v35, %v1545_v29  ;;  %v1549_v1 = vsub.f32 %v1543_v47, %v1545_v29  ;;  %1610 = vst.msk [vmem:[#allocation2] sm:$0x1] %vm1555_vm13, %v1545_v29 }
 0x630   : > { %v1547_v39 = vmul.f32 1.442695, %v1546_v22  ;;  %v1550_v43 = vmul.f32 1.442695, %v1549_v1 }
 0x632   : > { %2091 = vpow2.f32 %v1547_v39 }
 0x633   : > { %2093 = vpow2.f32 %v1550_v43 }
 0x63c   : > { %v2092_v44 = vpop.eup %2091 }
 0x63d   : > { %v2094_v18 = vpop.eup %2093  ;;  %v1553_v50 = vmul.f32 %v2092_v44, %v1552_v16  ;;  %v1569_v51 = vrot.slane %v2092_v44, %v803_v52  ;;  %v1562_v52 = vld [vmem:[#allocation4 + $0x28] sm:$0xff] }
 0x63e   : > { %1981 = vpush %v2094_v18 }
 0x63f   : > { %v1554_v57 = vadd.f32 %v2094_v18, %v1553_v50  ;;  %1571 = vperm.xlu0 %2004, %v1569_v51  }
 0x641   : > { %1556 = vst.msk [vmem:[#allocation3] sm:$0x1] %vm1555_vm13, %v1554_v57 }
 0x66f   : > { %s1982_s17 = spop %1981 }
 0x670   : > { %v1584_v62 = vstv %s1982_s17 }
 0x671   : > { %v1586_v42 = vmul.f32 %v1584_v62, %v2574_v30  ;;  %v1587_v49 = vmul.f32 %v1584_v62, %v2578_v15  ;;  %v1588_v4 = vmul.f32 %v1584_v62, %v2587_v20  ;;  %v1589_v45 = vmul.f32 %v1584_v62, %v2590_v23 }
 0x672   : > { %v1590_v8 = vmul.f32 %v1584_v62, %v2598_v54  ;;  %v1591_v40 = vmul.f32 %v1584_v62, %v2602_v7  ;;  %v1592_v9 = vmul.f32 %v1584_v62, %v2608_v36  ;;  %v1593_v11 = vmul.f32 %v1584_v62, %v2613_v38  ;;  %v1781_v36 = vld [vmem:[#allocation3] ss:$0 sm:$0xff] (!%p1780_p5) }
 0x673   : > { %v2115_v38 = vmov (!%p1780_p5), 0  }
 0x674   : > { %2095 = vset.pattern.permute.xlu0 (!%p1780_p5), %v2115_v38 }
 0x675   : > { %1630 = vperm.xlu0 (!%p1780_p5), %2095, %v1781_v36  }
 0x6be   : > { %v1572_v41 = vpop.permute.xlu0 %1571 }
 0x6bf   : > { %v1574_v13 = vmul.f32 %v1572_v41, %v1557_v0  ;;  %v1575_v30 = vmul.f32 %v1572_v41, %v1558_v59  ;;  %v1576_v26 = vmul.f32 %v1572_v41, %v1559_v25  ;;  %v1577_v15 = vmul.f32 %v1572_v41, %v1560_v31 }
 0x6c0   : > { %v1578_v24 = vmul.f32 %v1572_v41, %v1561_v60  ;;  %v1579_v20 = vmul.f32 %v1572_v41, %v1562_v52  ;;  %v1580_v10 = vmul.f32 %v1572_v41, %v1563_v5  ;;  %v1581_v23 = vmul.f32 %v1572_v41, %v1564_v6  ;;  %1614 = sbr.rel (%p1780_p5) target bundleno = 1798 (0x706), region = 64 }
 0x6c1   : > { %v1594_v46 = vadd.f32 %v1586_v42, %v1574_v13  ;;  %v1595_v12 = vadd.f32 %v1587_v49, %v1575_v30  ;;  %v1596_v63 = vadd.f32 %v1588_v4, %v1576_v26  ;;  %v1597_v14 = vadd.f32 %v1589_v45, %v1577_v15 }
 0x6c2   : > { %v1598_v54 = vadd.f32 %v1590_v8, %v1578_v24  ;;  %v1599_v56 = vadd.f32 %v1591_v40, %v1579_v20  ;;  %v1600_v7 = vadd.f32 %v1592_v9, %v1580_v10  ;;  %v1601_v34 = vadd.f32 %v1593_v11, %v1581_v23 }
 0x6c3   : > { %1602 = vst.msk [vmem:[#allocation4] sm:$0xff] %vm450_vm2, %v1594_v46  ;;  %1603 = vst.msk [vmem:[#allocation4 + $0x8] sm:$0xff] %vm450_vm2, %v1595_v12 }
 0x6c4   : > { %1604 = vst.msk [vmem:[#allocation4 + $0x10] sm:$0xff] %vm450_vm2, %v1596_v63  ;;  %1605 = vst.msk [vmem:[#allocation4 + $0x18] sm:$0xff] %vm450_vm2, %v1597_v14 }
 0x6c5   : > { %1606 = vst.msk [vmem:[#allocation4 + $0x20] sm:$0xff] %vm450_vm2, %v1598_v54  ;;  %1607 = vst.msk [vmem:[#allocation4 + $0x28] sm:$0xff] %vm450_vm2, %v1599_v56 }
 0x6c6   : > { %1608 = vst.msk [vmem:[#allocation4 + $0x30] sm:$0xff] %vm450_vm2, %v1600_v7  ;;  %1609 = vst.msk [vmem:[#allocation4 + $0x38] sm:$0xff] %vm450_vm2, %v1601_v34 }
 0x6ca   : > { %v1615_v58 = vld [vmem:[#allocation4] sm:$0xff]  ;;  %v1616_v37 = vld [vmem:[#allocation4 + $0x8] sm:$0xff] }
 0x6cb   : > { %v1617_v17 = vld [vmem:[#allocation4 + $0x10] sm:$0xff]  ;;  %v1618_v19 = vld [vmem:[#allocation4 + $0x18] sm:$0xff] }
 0x6cc   : > { %v1619_v21 = vld [vmem:[#allocation4 + $0x20] sm:$0xff]  ;;  %v1620_v27 = vld [vmem:[#allocation4 + $0x28] sm:$0xff] }
 0x6cd   : > { %v1621_v61 = vld [vmem:[#allocation4 + $0x30] sm:$0xff]  ;;  %v1622_v2 = vld [vmem:[#allocation4 + $0x38] sm:$0xff] }
 0x6f4   : > { %v1631_v33 = vpop.permute.xlu0 %1630 }
 0x6f5   : > { %2096 = vrcp.f32 %v1631_v33 }
 0x6ff   : > { %v2097_v55 = vpop.eup %2096 }
 0x700   : > { %v1634_v3 = vmul.f32 %v2097_v55, %v1615_v58  ;;  %v1635_v48 = vmul.f32 %v2097_v55, %v1616_v37  ;;  %v1636_v28 = vmul.f32 %v2097_v55, %v1617_v17  ;;  %v1637_v32 = vmul.f32 %v2097_v55, %v1618_v19 }
 0x701   : > { %v1638_v35 = vmul.f32 %v2097_v55, %v1619_v21  ;;  %v1639_v53 = vmul.f32 %v2097_v55, %v1620_v27  ;;  %v1640_v47 = vmul.f32 %v2097_v55, %v1621_v61  ;;  %v1641_v29 = vmul.f32 %v2097_v55, %v1622_v2 }
 0x702   : > { %1642 = vst.msk [vmem:[%s2698_s9] sm:$0xff] %vm450_vm2, %v1634_v3  ;;  %1643 = vst.msk [vmem:[%s2698_s9 + $0x8] sm:$0xff] %vm450_vm2, %v1635_v48 }
 0x703   : > { %1644 = vst.msk [vmem:[%s2698_s9 + $0x10] sm:$0xff] %vm450_vm2, %v1636_v28  ;;  %1645 = vst.msk [vmem:[%s2698_s9 + $0x18] sm:$0xff] %vm450_vm2, %v1637_v32 }
 0x704   : > { %1646 = vst.msk [vmem:[%s2698_s9 + $0x20] sm:$0xff] %vm450_vm2, %v1638_v35  ;;  %1647 = vst.msk [vmem:[%s2698_s9 + $0x28] sm:$0xff] %vm450_vm2, %v1639_v53 }
 0x705   : > { %1648 = vst.msk [vmem:[%s2698_s9 + $0x30] sm:$0xff] %vm450_vm2, %v1640_v47  ;;  %1649 = vst.msk [vmem:[%s2698_s9 + $0x38] sm:$0xff] %vm450_vm2, %v1641_v29 }
 0x706 PF: > { %s19_s30 = sadd.s32 1, %s2104_s30  }
 0x707   : > { %p16_p6 = scmp.ge.s32.totalorder %s19_s30, 5  }
 0x709   :  { %18 = sbr.rel (!%p16_p6) target bundleno = 1 (0x1), region = 102 }

</bundles_post_ra>
